<compile_context>
chip_gen: v6e
topology: v6e:2x2x1
jax: 0.10.0
libtpu: 0.0.40
codegen_flags: <defaults>
</compile_context>

<pallas_src>
import math

import jax
import jax.numpy as jnp
from jax.experimental import pallas as pl
from jax.experimental.pallas import tpu as pltpu

NEG_SLOPE = 0.01  # LeakyReLU negative slope
BN_EPS = 1e-5


def _round_up(n, m):
    return ((n + m - 1) // m) * m


def _pick_lane():
    """256-lane alignment on v6e/v7x (2x256^2 MXUs), 128 elsewhere (v5e: 4x128^2)."""
    try:
        kind = jax.devices()[0].device_kind.lower()
    except Exception:
        return 128
    return 256 if any(t in kind for t in ("v6", "v7", "7x")) else 128


# ----------------------------- Pallas kernel --------------------------------
def _make_fused_kernel(n_layers):
    """h = act((...act((x @ W0 + s0)) ...) @ W_{L-1} + s_{L-1}); W* in bf16, epilogue f32."""

    def kernel(*refs):
        # refs = (x_ref, W0, s0, W1, s1, ..., W_{L-1}, s_{L-1}, o_ref)
        x_ref = refs[0]
        o_ref = refs[-1]
        h = x_ref[...]                                   # f32
        for l in range(n_layers):
            w_ref = refs[1 + 2 * l]
            s_ref = refs[2 + 2 * l]
            y = jnp.dot(
                h.astype(w_ref.dtype),                   # bf16 MXU operands
                w_ref[...],
                preferred_element_type=jnp.float32,      # f32 accumulation
            )
            y = y + s_ref[...]                           # folded Linear-bias + BN shift (f32)
            h = jnp.maximum(y, NEG_SLOPE * y)            # LeakyReLU, f32 VPU path
        o_ref[...] = h.astype(o_ref.dtype)

    return kernel


def fused_forward(x_pad, fused_params, d_out, *, bm_cap=256):
    """x_pad: (B, Din_pad) f32, Din_pad lane-aligned.
    fused_params: list of (W_pad bf16 (Kin_pad, Kout_pad), shift f32 (1, Kout_pad)).
    Returns (B, d_out) f32 with padding lanes stripped."""
    B, Din_pad = x_pad.shape
    n_layers = len(fused_params)
    Dout_pad = fused_params[-1][0].shape[1]

    bm = B if B <= bm_cap else bm_cap
    assert B % bm == 0, "pad the batch to a multiple of the batch tile (bm_cap)"

    flops = sum(2 * B * w.shape[0] * w.shape[1] for w, _ in fused_params)
    weight_bytes = sum(w.size * w.dtype.itemsize + s.size * 4 for w, s in fused_params)
    bytes_accessed = x_pad.size * 4 + weight_bytes + B * Dout_pad * 4

    flat_args = [x_pad]
    for w, s in fused_params:
        flat_args.append(w)
        flat_args.append(s)

    def _run(single_buffer_weights):
        if single_buffer_weights:
            w_spec = lambda shape: pl.BlockSpec(
                shape, lambda i: (0, 0), pipeline_mode=pl.Buffered(1)
            )
            buf_mult = 1
        else:
            w_spec = lambda shape: pl.BlockSpec(shape, lambda i: (0, 0))
            buf_mult = 2

        in_specs = [pl.BlockSpec((bm, Din_pad), lambda i: (i, 0))]
        for w, s in fused_params:
            in_specs.append(w_spec(w.shape))
            in_specs.append(w_spec(s.shape))

        # VMEM budget: resident weights (x buffer count) + double-buffered x/out
        # tiles + f32 intermediates, plus headroom; capped at v7x physical 64 MiB.
        io_bytes = 2 * (bm * Din_pad + bm * Dout_pad) * 4
        inter_bytes = 2 * sum(bm * w.shape[1] * 4 for w, _ in fused_params)
        needed = weight_bytes * buf_mult + io_bytes + inter_bytes + (8 << 20)
        vmem_limit = int(min(64 << 20, max(needed, 32 << 20)))

        return pl.pallas_call(
            _make_fused_kernel(n_layers),
            out_shape=jax.ShapeDtypeStruct((B, Dout_pad), jnp.float32),
            grid=(B // bm,),
            in_specs=in_specs,
            out_specs=pl.BlockSpec((bm, Dout_pad), lambda i: (i, 0)),
            compiler_params=pltpu.CompilerParams(
                dimension_semantics=("parallel",),
                vmem_limit_bytes=vmem_limit,
            ),
            cost_estimate=pl.CostEstimate(
                flops=flops, transcendentals=0, bytes_accessed=bytes_accessed
            ),
        )(*flat_args)

    try:
        out_padded = _run(single_buffer_weights=True)
    except Exception:
        # Fallback if this JAX build rejects Buffered(1) on a pallas_call grid spec.
        out_padded = _run(single_buffer_weights=False)

    return out_padded[:, :d_out]


# --------------------------- parameter creation ------------------------------
def _xavier_uniform(key, out_f, in_f):
    a = math.sqrt(6.0 / (in_f + out_f))
    return jax.random.uniform(key, (out_f, in_f), jnp.float32, -a, a)


def _make_layer_params(key, in_f, out_f):
    k = jax.random.split(key, 6)
    bound = 1.0 / math.sqrt(in_f)
    return dict(
        W=_xavier_uniform(k[0], out_f, in_f),                                 # (out, in), torch layout
        b=jax.random.uniform(k[1], (out_f,), jnp.float32, -bound, bound),
        gamma=jax.random.uniform(k[2], (out_f,), jnp.float32, 0.5, 1.5),
        beta=jax.random.uniform(k[3], (out_f,), jnp.float32, -0.5, 0.5),
        mean=jax.random.uniform(k[4], (out_f,), jnp.float32, -0.1, 0.1),
        var=jax.random.uniform(k[5], (out_f,), jnp.float32, 0.5, 1.5),
    )


def init_params(key, nlayer, dim_list, chrom_list):
    assert len(dim_list) == nlayer + 1
    assert sum(chrom_list) == dim_list[-1]
    n_chrom = len(chrom_list)
    assert dim_list[nlayer - 1] % n_chrom == 0
    d_in_last = dim_list[nlayer - 1] // n_chrom

    params = {"layers": [], "chrom": []}
    for i in range(nlayer - 1):
        key, sub = jax.random.split(key)
        params["layers"].append(_make_layer_params(sub, dim_list[i], dim_list[i + 1]))
    for c in chrom_list:
        key, sub = jax.random.split(key)
        params["chrom"].append(_make_layer_params(sub, d_in_last, c))
    return params


def _fold_bn(p):
    scale = p["gamma"] / jnp.sqrt(p["var"] + BN_EPS)
    shift = (p["b"] - p["mean"]) * scale + p["beta"]
    return scale, shift


def prepare_fused_params(params, chrom_list, dim_list, nlayer, lane):
    """One-time setup: transpose, fold BN scale into weights (-> bf16), build the
    block-diagonal last layer, pad every feature dim to a multiple of `lane`."""
    fused = []
    in_dim_true = dim_list[0]
    in_dim = _round_up(dim_list[0], lane)                  # x is padded to this on host

    # hidden layers 0 .. nlayer-2
    for i in range(nlayer - 1):
        p = params["layers"][i]
        out_dim = dim_list[i + 1]
        out_pad = _round_up(out_dim, lane)
        scale, shift = _fold_bn(p)
        w = p["W"].T * scale[None, :]                      # (in_true, out), BN scale folded
        W_pad = jnp.zeros((in_dim, out_pad), jnp.float32)
        W_pad = W_pad.at[:in_dim_true, :out_dim].set(w)
        S_pad = jnp.zeros((1, out_pad), jnp.float32).at[0, :out_dim].set(shift)
        fused.append((W_pad.astype(jnp.bfloat16), S_pad))
        in_dim_true = out_dim
        in_dim = out_pad                                   # padded lanes carry exact zeros

    # last layer: per-chromosome linears collapsed into ONE block-diagonal weight.
    # TODO(synk): replace with a per-chromosome grid axis at production chrom counts.
    n_chrom = len(chrom_list)
    d_in = dim_list[nlayer - 1] // n_chrom
    d_out = sum(chrom_list)
    d_out_pad = _round_up(d_out, lane)
    W_pad = jnp.zeros((in_dim, d_out_pad), jnp.float32)
    S_pad = jnp.zeros((1, d_out_pad), jnp.float32)
    off = 0
    for j, c in enumerate(chrom_list):
        p = params["chrom"][j]
        scale, shift = _fold_bn(p)
        w = p["W"].T * scale[None, :]                      # (d_in, c)
        W_pad = W_pad.at[j * d_in : (j + 1) * d_in, off : off + c].set(w)
        S_pad = S_pad.at[0, off : off + c].set(shift)
        off += c
    fused.append((W_pad.astype(jnp.bfloat16), S_pad))
    return fused, d_out


# ------------------------------ forward pass ---------------------------------
def split_chrom_decoder_forward(x, fused_params, d_out, lane, *, bm_cap=256):
    # noise_dropout / dropout (eval) -> identity
    B, Din = x.shape
    Din_pad = _round_up(Din, lane)
    x_pad = jnp.zeros((B, Din_pad), jnp.float32).at[:, :Din].set(x)
    return fused_forward(x_pad, fused_params, d_out, bm_cap=bm_cap)


# pure-JAX reference (same math as the PyTorch module in eval mode, full f32)
def _reference_forward(x, params, chrom_list, dim_list, nlayer):
    def layer(xin, p):
        y = xin @ p["W"].T + p["b"]
        y = (y - p["mean"]) / jnp.sqrt(p["var"] + BN_EPS) * p["gamma"] + p["beta"]
        return jnp.where(y > 0, y, NEG_SLOPE * y)

    h = x
    for i in range(nlayer - 1):
        h = layer(h, params["layers"][i])
    n_chrom = len(chrom_list)
    d_in = dim_list[nlayer - 1] // n_chrom
    outs = []
    for j in range(n_chrom):
        xj = h[:, j * d_in : (j + 1) * d_in]
        outs.append(layer(xj, params["chrom"][j]))
    return jnp.concatenate(outs, axis=1)


# ---------------------------------- main --------------------------------------
if __name__ == "__main__":
    key = jax.random.PRNGKey(0)

    # small, consistent configuration (decoder: latent -> peaks per chromosome)
    nlayer = 3
    chrom_list = [40, 56, 32]                 # peaks per chromosome, sum = 128
    dim_list = [32, 64, 96, 128]              # len = nlayer+1 ; dim_list[-1] == sum(chrom_list)
    batch = 512                               # 2 batch tiles of 256 -> both v7x TCs get work

    lane = _pick_lane()

    kp, kx = jax.random.split(key)
    params = init_params(kp, nlayer, dim_list, chrom_list)
    fused_params, d_out = prepare_fused_params(params, chrom_list, dim_list, nlayer, lane)
    x = jax.random.uniform(kx, (batch, dim_list[0]), jnp.float32)

    out = split_chrom_decoder_forward(x, fused_params, d_out, lane, bm_cap=256)
    out = jax.block_until_ready(out)

    ref = _reference_forward(x, params, chrom_list, dim_list, nlayer)
    assert out.shape == (batch, d_out)
    assert bool(jnp.all(jnp.isfinite(out)))
    # bf16 MXU operands (f32 accumulation) -> slightly looser tolerance than pure f32.
    assert jnp.allclose(out, ref, atol=5e-2, rtol=5e-2)

    print("KERNEL_OK")
</pallas_src>

<mosaic_0001>
module attributes {stable_mosaic.version = 11 : i64} {
  func.func @kernel(%arg0: i32, %arg1: memref<256x128xf32, #tpu.memory_space<vmem>>, %arg2: memref<128x128xbf16, #tpu.memory_space<vmem>>, %arg3: memref<1x128xf32, #tpu.memory_space<vmem>>, %arg4: memref<128x128xbf16, #tpu.memory_space<vmem>>, %arg5: memref<1x128xf32, #tpu.memory_space<vmem>>, %arg6: memref<128x128xbf16, #tpu.memory_space<vmem>>, %arg7: memref<1x128xf32, #tpu.memory_space<vmem>>, %arg8: memref<256x128xf32, #tpu.memory_space<vmem>>) attributes {dimension_semantics = [#tpu.dimension_semantics<parallel>], iteration_bounds = array<i64: 2>, scalar_prefetch = 0 : i64, scratch_operands = 0 : i64, tpu.core_type = #tpu.core_type<tc>, window_params = [{transform_indices = @transform_0, window_bounds = array<i64: 256, 128>}, {pipeline_mode = #tpu.pipeline_mode<synchronous>, transform_indices = @transform_1, window_bounds = array<i64: 128, 128>}, {pipeline_mode = #tpu.pipeline_mode<synchronous>, transform_indices = @transform_2, window_bounds = array<i64: 1, 128>}, {pipeline_mode = #tpu.pipeline_mode<synchronous>, transform_indices = @transform_3, window_bounds = array<i64: 128, 128>}, {pipeline_mode = #tpu.pipeline_mode<synchronous>, transform_indices = @transform_4, window_bounds = array<i64: 1, 128>}, {pipeline_mode = #tpu.pipeline_mode<synchronous>, transform_indices = @transform_5, window_bounds = array<i64: 128, 128>}, {pipeline_mode = #tpu.pipeline_mode<synchronous>, transform_indices = @transform_6, window_bounds = array<i64: 1, 128>}, {transform_indices = @transform_7, window_bounds = array<i64: 256, 128>}]} {
    %c0 = arith.constant 0 : index
    %c0_0 = arith.constant 0 : index
    %0 = vector.load %arg1[%c0, %c0_0] : memref<256x128xf32, #tpu.memory_space<vmem>>, vector<256x128xf32>
    %1 = arith.truncf %0 : vector<256x128xf32> to vector<256x128xbf16>
    %c0_1 = arith.constant 0 : index
    %c0_2 = arith.constant 0 : index
    %2 = vector.load %arg2[%c0_1, %c0_2] : memref<128x128xbf16, #tpu.memory_space<vmem>>, vector<128x128xbf16>
    %cst = arith.constant dense<0.000000e+00> : vector<256x128xf32>
    %3 = tpu.matmul %1, %2, %cst {dimension_numbers = #tpu.dot_dimension_numbers<[1], [0], [0], [1], [0, 0, 1, 1], [], []>} : vector<256x128xbf16>, vector<128x128xbf16>, vector<256x128xf32> -> vector<256x128xf32>
    %c0_3 = arith.constant 0 : index
    %c0_4 = arith.constant 0 : index
    %4 = vector.load %arg3[%c0_3, %c0_4] : memref<1x128xf32, #tpu.memory_space<vmem>>, vector<1x128xf32>
    %5 = vector.broadcast %4 : vector<1x128xf32> to vector<256x128xf32>
    %6 = arith.addf %3, %5 : vector<256x128xf32>
    %cst_5 = arith.constant 0.00999999977 : f32
    %7 = vector.broadcast %cst_5 : f32 to vector<256x128xf32>
    %8 = arith.mulf %7, %6 : vector<256x128xf32>
    %9 = arith.maximumf %6, %8 : vector<256x128xf32>
    %10 = arith.truncf %9 : vector<256x128xf32> to vector<256x128xbf16>
    %c0_6 = arith.constant 0 : index
    %c0_7 = arith.constant 0 : index
    %11 = vector.load %arg4[%c0_6, %c0_7] : memref<128x128xbf16, #tpu.memory_space<vmem>>, vector<128x128xbf16>
    %cst_8 = arith.constant dense<0.000000e+00> : vector<256x128xf32>
    %12 = tpu.matmul %10, %11, %cst_8 {dimension_numbers = #tpu.dot_dimension_numbers<[1], [0], [0], [1], [0, 0, 1, 1], [], []>} : vector<256x128xbf16>, vector<128x128xbf16>, vector<256x128xf32> -> vector<256x128xf32>
    %c0_9 = arith.constant 0 : index
    %c0_10 = arith.constant 0 : index
    %13 = vector.load %arg5[%c0_9, %c0_10] : memref<1x128xf32, #tpu.memory_space<vmem>>, vector<1x128xf32>
    %14 = vector.broadcast %13 : vector<1x128xf32> to vector<256x128xf32>
    %15 = arith.addf %12, %14 : vector<256x128xf32>
    %cst_11 = arith.constant 0.00999999977 : f32
    %16 = vector.broadcast %cst_11 : f32 to vector<256x128xf32>
    %17 = arith.mulf %16, %15 : vector<256x128xf32>
    %18 = arith.maximumf %15, %17 : vector<256x128xf32>
    %19 = arith.truncf %18 : vector<256x128xf32> to vector<256x128xbf16>
    %c0_12 = arith.constant 0 : index
    %c0_13 = arith.constant 0 : index
    %20 = vector.load %arg6[%c0_12, %c0_13] : memref<128x128xbf16, #tpu.memory_space<vmem>>, vector<128x128xbf16>
    %cst_14 = arith.constant dense<0.000000e+00> : vector<256x128xf32>
    %21 = tpu.matmul %19, %20, %cst_14 {dimension_numbers = #tpu.dot_dimension_numbers<[1], [0], [0], [1], [0, 0, 1, 1], [], []>} : vector<256x128xbf16>, vector<128x128xbf16>, vector<256x128xf32> -> vector<256x128xf32>
    %c0_15 = arith.constant 0 : index
    %c0_16 = arith.constant 0 : index
    %22 = vector.load %arg7[%c0_15, %c0_16] : memref<1x128xf32, #tpu.memory_space<vmem>>, vector<1x128xf32>
    %23 = vector.broadcast %22 : vector<1x128xf32> to vector<256x128xf32>
    %24 = arith.addf %21, %23 : vector<256x128xf32>
    %cst_17 = arith.constant 0.00999999977 : f32
    %25 = vector.broadcast %cst_17 : f32 to vector<256x128xf32>
    %26 = arith.mulf %25, %24 : vector<256x128xf32>
    %27 = arith.maximumf %24, %26 : vector<256x128xf32>
    %c0_18 = arith.constant 0 : index
    %c0_19 = arith.constant 0 : index
    %28 = vector.load %arg8[%c0_18, %c0_19] : memref<256x128xf32, #tpu.memory_space<vmem>>, vector<256x128xf32>
    tpu.vector_store %arg8[%c0_18, %c0_19], %27 {strides = array<i32>} : memref<256x128xf32, #tpu.memory_space<vmem>>, vector<256x128xf32>,
    return
  }
  func.func @transform_0(%arg0: i32) -> (i32, i32) {
    %c0_i32 = arith.constant 0 : i32
    %c0_i32_0 = arith.constant 0 : i32
    return %arg0, %c0_i32 : i32, i32
  }
  func.func @transform_1(%arg0: i32) -> (i32, i32) {
    %c0_i32 = arith.constant 0 : i32
    %c0_i32_0 = arith.constant 0 : i32
    %c0_i32_1 = arith.constant 0 : i32
    return %c0_i32, %c0_i32_0 : i32, i32
  }
  func.func @transform_2(%arg0: i32) -> (i32, i32) {
    %c0_i32 = arith.constant 0 : i32
    %c0_i32_0 = arith.constant 0 : i32
    %c0_i32_1 = arith.constant 0 : i32
    return %c0_i32, %c0_i32_0 : i32, i32
  }
  func.func @transform_3(%arg0: i32) -> (i32, i32) {
    %c0_i32 = arith.constant 0 : i32
    %c0_i32_0 = arith.constant 0 : i32
    %c0_i32_1 = arith.constant 0 : i32
    return %c0_i32, %c0_i32_0 : i32, i32
  }
  func.func @transform_4(%arg0: i32) -> (i32, i32) {
    %c0_i32 = arith.constant 0 : i32
    %c0_i32_0 = arith.constant 0 : i32
    %c0_i32_1 = arith.constant 0 : i32
    return %c0_i32, %c0_i32_0 : i32, i32
  }
  func.func @transform_5(%arg0: i32) -> (i32, i32) {
    %c0_i32 = arith.constant 0 : i32
    %c0_i32_0 = arith.constant 0 : i32
    %c0_i32_1 = arith.constant 0 : i32
    return %c0_i32, %c0_i32_0 : i32, i32
  }
  func.func @transform_6(%arg0: i32) -> (i32, i32) {
    %c0_i32 = arith.constant 0 : i32
    %c0_i32_0 = arith.constant 0 : i32
    %c0_i32_1 = arith.constant 0 : i32
    return %c0_i32, %c0_i32_0 : i32, i32
  }
  func.func @transform_7(%arg0: i32) -> (i32, i32) {
    %c0_i32 = arith.constant 0 : i32
    %c0_i32_0 = arith.constant 0 : i32
    return %arg0, %c0_i32 : i32, i32
  }
}

module attributes {stable_mosaic.version = 11 : i64} {
  func.func @kernel(%arg0: i32, %arg1: memref<256x128xf32, #tpu.memory_space<vmem>>, %arg2: memref<128x128xbf16, #tpu.memory_space<vmem>>, %arg3: memref<1x128xf32, #tpu.memory_space<vmem>>, %arg4: memref<128x128xbf16, #tpu.memory_space<vmem>>, %arg5: memref<1x128xf32, #tpu.memory_space<vmem>>, %arg6: memref<128x128xbf16, #tpu.memory_space<vmem>>, %arg7: memref<1x128xf32, #tpu.memory_space<vmem>>, %arg8: memref<256x128xf32, #tpu.memory_space<vmem>>) attributes {dimension_semantics = [#tpu.dimension_semantics<parallel>], iteration_bounds = array<i64: 2>, scalar_prefetch = 0 : i64, scratch_operands = 0 : i64, tpu.core_type = #tpu.core_type<tc>, window_params = [{transform_indices = @transform_0, window_bounds = array<i64: 256, 128>}, {pipeline_mode = #tpu.pipeline_mode<synchronous>, transform_indices = @transform_1, window_bounds = array<i64: 128, 128>}, {pipeline_mode = #tpu.pipeline_mode<synchronous>, transform_indices = @transform_2, window_bounds = array<i64: 1, 128>}, {pipeline_mode = #tpu.pipeline_mode<synchronous>, transform_indices = @transform_3, window_bounds = array<i64: 128, 128>}, {pipeline_mode = #tpu.pipeline_mode<synchronous>, transform_indices = @transform_4, window_bounds = array<i64: 1, 128>}, {pipeline_mode = #tpu.pipeline_mode<synchronous>, transform_indices = @transform_5, window_bounds = array<i64: 128, 128>}, {pipeline_mode = #tpu.pipeline_mode<synchronous>, transform_indices = @transform_6, window_bounds = array<i64: 1, 128>}, {transform_indices = @transform_7, window_bounds = array<i64: 256, 128>}]} {
    %c0 = arith.constant 0 : index
    %c0_0 = arith.constant 0 : index
    %0 = vector.load %arg1[%c0, %c0_0] : memref<256x128xf32, #tpu.memory_space<vmem>>, vector<256x128xf32>
    %1 = arith.truncf %0 : vector<256x128xf32> to vector<256x128xbf16>
    %c0_1 = arith.constant 0 : index
    %c0_2 = arith.constant 0 : index
    %2 = vector.load %arg2[%c0_1, %c0_2] : memref<128x128xbf16, #tpu.memory_space<vmem>>, vector<128x128xbf16>
    %cst = arith.constant dense<0.000000e+00> : vector<256x128xf32>
    %3 = tpu.matmul %1, %2, %cst {dimension_numbers = #tpu.dot_dimension_numbers<[1], [0], [0], [1], [0, 0, 1, 1], [], []>} : vector<256x128xbf16>, vector<128x128xbf16>, vector<256x128xf32> -> vector<256x128xf32>
    %c0_3 = arith.constant 0 : index
    %c0_4 = arith.constant 0 : index
    %4 = vector.load %arg3[%c0_3, %c0_4] : memref<1x128xf32, #tpu.memory_space<vmem>>, vector<1x128xf32>
    %5 = vector.broadcast %4 : vector<1x128xf32> to vector<256x128xf32>
    %6 = arith.addf %3, %5 : vector<256x128xf32>
    %cst_5 = arith.constant 0.00999999977 : f32
    %7 = vector.broadcast %cst_5 : f32 to vector<256x128xf32>
    %8 = arith.mulf %7, %6 : vector<256x128xf32>
    %9 = arith.maximumf %6, %8 : vector<256x128xf32>
    %10 = arith.truncf %9 : vector<256x128xf32> to vector<256x128xbf16>
    %c0_6 = arith.constant 0 : index
    %c0_7 = arith.constant 0 : index
    %11 = vector.load %arg4[%c0_6, %c0_7] : memref<128x128xbf16, #tpu.memory_space<vmem>>, vector<128x128xbf16>
    %cst_8 = arith.constant dense<0.000000e+00> : vector<256x128xf32>
    %12 = tpu.matmul %10, %11, %cst_8 {dimension_numbers = #tpu.dot_dimension_numbers<[1], [0], [0], [1], [0, 0, 1, 1], [], []>} : vector<256x128xbf16>, vector<128x128xbf16>, vector<256x128xf32> -> vector<256x128xf32>
    %c0_9 = arith.constant 0 : index
    %c0_10 = arith.constant 0 : index
    %13 = vector.load %arg5[%c0_9, %c0_10] : memref<1x128xf32, #tpu.memory_space<vmem>>, vector<1x128xf32>
    %14 = vector.broadcast %13 : vector<1x128xf32> to vector<256x128xf32>
    %15 = arith.addf %12, %14 : vector<256x128xf32>
    %cst_11 = arith.constant 0.00999999977 : f32
    %16 = vector.broadcast %cst_11 : f32 to vector<256x128xf32>
    %17 = arith.mulf %16, %15 : vector<256x128xf32>
    %18 = arith.maximumf %15, %17 : vector<256x128xf32>
    %19 = arith.truncf %18 : vector<256x128xf32> to vector<256x128xbf16>
    %c0_12 = arith.constant 0 : index
    %c0_13 = arith.constant 0 : index
    %20 = vector.load %arg6[%c0_12, %c0_13] : memref<128x128xbf16, #tpu.memory_space<vmem>>, vector<128x128xbf16>
    %cst_14 = arith.constant dense<0.000000e+00> : vector<256x128xf32>
    %21 = tpu.matmul %19, %20, %cst_14 {dimension_numbers = #tpu.dot_dimension_numbers<[1], [0], [0], [1], [0, 0, 1, 1], [], []>} : vector<256x128xbf16>, vector<128x128xbf16>, vector<256x128xf32> -> vector<256x128xf32>
    %c0_15 = arith.constant 0 : index
    %c0_16 = arith.constant 0 : index
    %22 = vector.load %arg7[%c0_15, %c0_16] : memref<1x128xf32, #tpu.memory_space<vmem>>, vector<1x128xf32>
    %23 = vector.broadcast %22 : vector<1x128xf32> to vector<256x128xf32>
    %24 = arith.addf %21, %23 : vector<256x128xf32>
    %cst_17 = arith.constant 0.00999999977 : f32
    %25 = vector.broadcast %cst_17 : f32 to vector<256x128xf32>
    %26 = arith.mulf %25, %24 : vector<256x128xf32>
    %27 = arith.maximumf %24, %26 : vector<256x128xf32>
    %c0_18 = arith.constant 0 : index
    %c0_19 = arith.constant 0 : index
    %28 = vector.load %arg8[%c0_18, %c0_19] : memref<256x128xf32, #tpu.memory_space<vmem>>, vector<256x128xf32>
    tpu.vector_store %arg8[%c0_18, %c0_19], %27 {strides = array<i32>} : memref<256x128xf32, #tpu.memory_space<vmem>>, vector<256x128xf32>,
    return
  }
  func.func @transform_0(%arg0: i32) -> (i32, i32) {
    %c0_i32 = arith.constant 0 : i32
    %c0_i32_0 = arith.constant 0 : i32
    return %arg0, %c0_i32 : i32, i32
  }
  func.func @transform_1(%arg0: i32) -> (i32, i32) {
    %c0_i32 = arith.constant 0 : i32
    %c0_i32_0 = arith.constant 0 : i32
    %c0_i32_1 = arith.constant 0 : i32
    return %c0_i32, %c0_i32_0 : i32, i32
  }
  func.func @transform_2(%arg0: i32) -> (i32, i32) {
    %c0_i32 = arith.constant 0 : i32
    %c0_i32_0 = arith.constant 0 : i32
    %c0_i32_1 = arith.constant 0 : i32
    return %c0_i32, %c0_i32_0 : i32, i32
  }
  func.func @transform_3(%arg0: i32) -> (i32, i32) {
    %c0_i32 = arith.constant 0 : i32
    %c0_i32_0 = arith.constant 0 : i32
    %c0_i32_1 = arith.constant 0 : i32
    return %c0_i32, %c0_i32_0 : i32, i32
  }
  func.func @transform_4(%arg0: i32) -> (i32, i32) {
    %c0_i32 = arith.constant 0 : i32
    %c0_i32_0 = arith.constant 0 : i32
    %c0_i32_1 = arith.constant 0 : i32
    return %c0_i32, %c0_i32_0 : i32, i32
  }
  func.func @transform_5(%arg0: i32) -> (i32, i32) {
    %c0_i32 = arith.constant 0 : i32
    %c0_i32_0 = arith.constant 0 : i32
    %c0_i32_1 = arith.constant 0 : i32
    return %c0_i32, %c0_i32_0 : i32, i32
  }
  func.func @transform_6(%arg0: i32) -> (i32, i32) {
    %c0_i32 = arith.constant 0 : i32
    %c0_i32_0 = arith.constant 0 : i32
    %c0_i32_1 = arith.constant 0 : i32
    return %c0_i32, %c0_i32_0 : i32, i32
  }
  func.func @transform_7(%arg0: i32) -> (i32, i32) {
    %c0_i32 = arith.constant 0 : i32
    %c0_i32_0 = arith.constant 0 : i32
    return %arg0, %c0_i32 : i32, i32
  }
}

</mosaic_0001>

<bundles_post_ra>
// kernel: tpu_custom_call.1
= control target key start
LH: loop header
LB: loop body
LE: loop exit
PB: predicated region body
PF: predicated region fallthrough
CT: control target
= control target key end

     0   :  { %s2481_s0 = inlined_call_operand.hbm [shape: f32[512,128], index: 0, kind: input, shape index: {}]   ;;  %s2482_s1 = inlined_call_operand.hbm [shape: bf16[128,128], index: 1, kind: input, shape index: {}]   ;;  %s2483_s2 = inlined_call_operand.vmem [shape: f32[1,128], index: 2, kind: input, shape index: {}]   ;;  %s2484_s3 = inlined_call_operand.hbm [shape: bf16[128,128], index: 3, kind: input, shape index: {}]   ;;  %s2485_s4 = inlined_call_operand.vmem [shape: f32[1,128], index: 4, kind: input, shape index: {}]   ;;  %s2486_s5 = inlined_call_operand.hbm [shape: bf16[128,128], index: 5, kind: input, shape index: {}]   ;;  %s2487_s6 = inlined_call_operand.vmem [shape: f32[1,128], index: 6, kind: input, shape index: {}]   ;;  %s2488_s7 = inlined_call_operand.hbm [shape: f32[512,128], index: 7, kind: output, shape index: {}]  }
   0x1   :  { %2493 = sst [smem:[#allocation15_spill]] %s2482_s1 }
   0x2   :  { %12 = vsyncpa [#allocation3], 0 }
   0x3   :  { %14 = vsyncpa [#allocation3 + $0x1], 0 }
   0x4   :  { %15 = vsyncpa [#allocation6], 0 }
   0x5   :  { %16 = vsyncpa [#allocation9], 0 }
   0x6   :  { %17 = vsyncpa [#allocation4], 0 }
   0x7   :  { %19 = vsyncpa [#allocation4 + $0x1], 0  ;;  %s2079_s24 = smov 0   ;;  %s2081_s25 = smov 0  }
   0x8   :  { %s2083_s26 = smov 0   ;;  %s2085_s27 = smov 0  }
   0x9 LB: > { %s2100_s28 = sadd.s32 4294967295, %s2026_s27   ;;  %s1460_s29 = sadd.s32 4294967294, %s2026_s27   ;;  %s2026_s27 = sphi %s2085_s27, %s2514_s27   ;;  %s2022_s26 = sphi %s2083_s26, %s2513_s26   ;;  %s2018_s25 = sphi %s2081_s25, %s2512_s25   ;;  %s2014_s24 = sphi %s2079_s24, %s2511_s24  }
   0xa   : > { %p45_p0 = scmp.ne.s32.totalorder %s2018_s25, %s2014_s24  ;;  %p2489_p1 = scmp.eq.s32.totalorder %s2100_s28, 0 }
   0xb   : > { %p201_p3 = scmp.eq.s32.totalorder %s1460_s29, 1  ;;  %p1461_p5 = scmp.ge.s32.totalorder %s2026_s27, 1 }
   0xc   : > { %p2109_p4 = por %p2489_p1, %p45_p0  ;;  %p208_p7 = scmp.lt.s32.totalorder %s2026_s27, 3 }
   0xd   : > { %p2114_p6 = por %p201_p3, %p45_p0  ;;  %s2028_s10 = smov [#allocation5]  }
   0xe   : > { %s2494_s30 = scalar_select %p2109_p4, 1, 0 }
   0xf   : > { %s2495_s8 = scalar_select %p2114_p6, 1, 0 }
  0x10   : > { %p2119_p8 = pnand %p1461_p5, %p208_p7  ;;  %s220_s11 = sshll.u32 %s2028_s10, 4  ;;  %s221_s11 = int_to_ptr.vmem [resolvable:$true] %s220_s11 }
  0x11   : > { %s2029_s13 = smov [#allocation7]   ;;  %s2030_s15 = smov [#allocation8]  }
  0x12   : > { %s2496_s9 = scalar_select %p2119_p8, 1, 0 }
  0x13   : > { %p1757_p9 = pneg %p2119_p8  ;;  %s236_s14 = sshll.u32 %s2029_s13, 4  ;;  %s237_s14 = int_to_ptr.vmem [resolvable:$true] %s236_s14 }
  0x14   : > { %s252_s16 = sshll.u32 %s2030_s15, 4  ;;  %s1859_s17 = scalar_lea.vmem %s221_s11, 1024  ;;  %s253_s16 = int_to_ptr.vmem [resolvable:$true] %s252_s16 }
  0x15   : > { %p2128_p11 = pnand %p1757_p9, %p2489_p1  ;;  %p1860_p13 = scmp.ne.s32.totalorder %s221_s11, %s1859_s17 }
  0x16   : > { %p1867_p5 = scmp.lt.s32.totalorder %s221_s11, %s221_s11  ;;  %p1868_p7 = scmp.lt.s32.totalorder %s1859_s17, %s1859_s17 }
  0x17   : > { %p1850_p12 = pneg %p2128_p11 }
  0x18   : > { %p1869_p9 = por %p1868_p7, %p1867_p5 }
  0x19   : > { %p1862_p0 = pnand %p1860_p13, %p1850_p12 }
  0x1b   : > { %p1863_p3 = pneg %p1862_p0 }
  0x1d   : > { %p1870_p10 = pnand %p1869_p9, %p1863_p3 }
  0x1f   : > { %1873 = shalt.err (!%p1870_p10)
}
  0x20   : > { %s2031_s18 = smov 64   ;;  %s2032_s19 = smov 4  }
  0x21   : > { %s2498_s1 = sld [smem:[#allocation15_spill]]  ;;  %s1885_s22 = scalar_lea.vmem %s237_s14, 1024 }
  0x22   : > { %p1886_p1 = scmp.ne.s32.totalorder %s237_s14, %s1885_s22  ;;  %p1893_p2 = scmp.lt.s32.totalorder %s237_s14, %s237_s14 }
  0x23   : > { %p1894_p6 = scmp.lt.s32.totalorder %s1885_s22, %s1885_s22 }
  0x24   : > { %p1888_p13 = pnand %p1886_p1, %p1850_p12 }
  0x25   : > { %p1895_p5 = por %p1894_p6, %p1893_p2 }
  0x26   : > { %p1889_p0 = pneg %p1888_p13 }
  0x27   : > { %1760 = dma.hbm_to_vmem [thread:$0]  (!%p2128_p11), %s2498_s1, 1024, %s221_s11, [#allocation6], %s2031_s18, %s2031_s18, %s2032_s19  }
  0x28   : > { %p1896_p3 = pnand %p1895_p5, %p1889_p0 }
  0x2a   : > { %1899 = shalt.err (!%p1896_p3)
}
  0x2b   : > { %1763 = dma.hbm_to_vmem [thread:$0]  (!%p2128_p11), %s2484_s3, 1024, %s237_s14, [#allocation6], %s2031_s18, %s2031_s18, %s2032_s19  }
  0x2c   : > { %s1911_s10 = scalar_lea.vmem %s253_s16, 1024  ;;  %p1919_p9 = scmp.lt.s32.totalorder %s253_s16, %s253_s16 }
  0x2d   : > { %p1912_p10 = scmp.ne.s32.totalorder %s253_s16, %s1911_s10  ;;  %p1920_p13 = scmp.lt.s32.totalorder %s1911_s10, %s1911_s10 }
  0x2f   : > { %p1914_p7 = pnand %p1912_p10, %p1850_p12  ;;  %p1921_p4 = por %p1920_p13, %p1919_p9 }
  0x31   : > { %p1915_p1 = pneg %p1914_p7 }
  0x33   : > { %p1922_p2 = pnand %p1921_p4, %p1915_p1 }
  0x35   : > { %1925 = shalt.err (!%p1922_p2)
}
  0x36   : > { %1766 = dma.hbm_to_vmem [thread:$0]  (!%p2128_p11), %s2486_s5, 1024, %s253_s16, [#allocation9], %s2031_s18, %s2031_s18, %s2032_s19  }
  0x37   : > { %s2159_s14 = sadd.s32 1, %s2026_s27   ;;  %s32_s12 = sadd.s32 1, %s2022_s26 }
  0x38   : > { %s29_s15 = ssub.s32 %s2026_s27, %s2159_s14  ;;  %p39_p6 = scmp.ne.s32.totalorder %s2022_s26, %s2018_s25 }
  0x39   : > { %p30_p4 = scmp.eq.s32.totalorder %s29_s15, 0  ;;  %p40_p12 = scmp.eq.s32.totalorder %s2026_s27, 0 }
  0x3a   : > { %p1778_p0 = scmp.lt.s32.totalorder %s2026_s27, 2  ;;  %p2499_p3 = scmp.eq.s32.totalorder %s2100_s28, 1 }
  0x3b   : > { %s2169_s17 = scalar_select %p30_p4, %s2022_s26, %s32_s12  }
  0x3c   : > { %p41_p5 = por %p40_p12, %p39_p6  ;;  %p2173_p10 = por %p2499_p3, %p39_p6 }
  0x3d   : > { %s269_s21 = sand.u32 1, %s2022_s26   ;;  %s1507_s22 = sshll.u32 %s2026_s27, 12 }
  0x3e   : > { %s2500_s20 = scalar_select %p2173_p10, 1, 0 }
  0x3f   : > { %s1466_s16 = sshll.u32 %s269_s21, 8  ;;  %s2182_s23 = scalar_lea.hbm %s2481_s0, %s1507_s22 }
  0x40   : > { %s273_s29 = scalar_lea.vmem [#allocation2], %s1466_s16  ;;  %p2184_p11 = pnand %p1778_p0, %p41_p5 }
  0x41   : > { %s280_s10 = sshll.u32 %s273_s29, 4  ;;  %s2190_s13 = scalar_lea.sflag [#allocation3], %s269_s21  ;;  %s2188_s10 = int_to_ptr.vmem [resolvable:$true] %s280_s10 }
  0x42   : > { %s1926_s15 = scalar_lea.hbm %s2182_s23, 4096  ;;  %p1928_p1 = pneg %p2184_p11 }
  0x43   : > { %p1927_p7 = scmp.ne.s32.totalorder %s2182_s23, %s1926_s15  ;;  %s1931_s16 = scalar_lea.hbm %s2481_s0, 8192 }
  0x44   : > { %p1932_p2 = scmp.lt.s32.totalorder %s2182_s23, %s2481_s0  ;;  %p1933_p4 = scmp.lt.s32.totalorder %s1931_s16, %s1926_s15 }
  0x45   : > { %p1929_p9 = pnand %p1928_p1, %p1927_p7 }
  0x46   : > { %p1934_p6 = por %p1933_p4, %p1932_p2 }
  0x47   : > { %p1930_p13 = pneg %p1929_p9 }
  0x49   : > { %p1935_p12 = pnand %p1934_p6, %p1930_p13 }
  0x4b   : > { %1938 = shalt.err (!%p1935_p12)
}
  0x4c   : > { %s1939_s21 = scalar_lea.vmem %s2188_s10, 4096  ;;  %s2033_s29 = smov [#allocation2]  }
  0x4d   : > { %p1940_p0 = scmp.ne.s32.totalorder %s2188_s10, %s1939_s21  ;;  %s1944_s1 = sshll.u32 %s2033_s29, 4  ;;  %s1945_s1 = int_to_ptr.vmem [resolvable:$false] %s1944_s1 }
  0x4e   : > { %s1946_s12 = scalar_lea.vmem %s1945_s1, 8192  ;;  %p1947_p7 = scmp.lt.s32.totalorder %s2188_s10, %s1945_s1 }
  0x4f   : > { %p1942_p5 = pnand %p1940_p0, %p1928_p1  ;;  %p1948_p9 = scmp.lt.s32.totalorder %s1946_s12, %s1939_s21 }
  0x51   : > { %p1943_p3 = pneg %p1942_p5  ;;  %p1949_p10 = por %p1948_p9, %p1947_p7 }
  0x53   : > { %p1950_p8 = pnand %p1949_p10, %p1943_p3 }
  0x55   : > { %1953 = shalt.err (!%p1950_p8)
}
  0x56   : > { %s2034_s15 = smov 128   ;;  %s2035_s22 = smov 8  }
  0x57   : > { %1770 = dma.hbm_to_vmem [thread:$0]  (!%p2184_p11), %s2182_s23, 4096, %s2188_s10, %s2190_s13, %s2034_s15, %s2034_s15, %s2035_s22  }
  0x58   : > { %p2502_p1 = scmp.ne.s32.totalorder %s2496_s9, 0 }
  0x59   : > { %s2214_s16 = sand.u32 (!%p2502_p1), 1, %s2018_s25   ;;  %p2503_p8 = scmp.ne.s32.totalorder (!%p2502_p1), %s2494_s30, 0 }
  0x5a   : > { %292 = sbr.rel (%p2502_p1) target bundleno = 826 (0x33a), region = 48  ;;  %s1470_s1 = sshll.u32 (!%p2502_p1), %s2214_s16, 8 }
  0x5b   : > { %s295_s18 = scalar_lea.sflag (!%p2502_p1), [#allocation3], %s2214_s16  ;;  %s2220_s19 = scalar_lea.vmem (!%p2502_p1), [#allocation2], %s1470_s1 }
  0x5f   : > { %1997 = dma.done.wait (%p2503_p8), %s295_s18, 4096  }
  0x60   : > { %1999 = vsyncadd (%p2503_p8), %s295_s18, 4294963200  ;;  %p2504_p10 = scmp.eq.s32.totalorder %s2100_s28, 0 }
  0x62   : > { %2001 = dma.done.wait (%p2504_p10), [#allocation6], 2048   ;;  %p2505_p11 = pmov %p2504_p10 }
  0x63   : > { %p2506_p13 = pmov %p2504_p10 }
  0x64   : > { %2003 = vsyncadd (%p2505_p11), [#allocation6], 4294965248 }
  0x65   : > { %2005 = dma.done.wait (%p2506_p13), [#allocation9], 1024   ;;  %p2507_p2 = pmov %p2504_p10 }
  0x66   : > { %v1824_v0 = vld [vmem:[#allocation5 + $0x38] sm:$0xff]   ;;  %v1825_v1 = vld [vmem:[#allocation5 + $0x30] sm:$0xff]   ;;  %v1826_v2 = vld [vmem:[#allocation5 + $0x28] sm:$0xff]   ;;  %s2368_s21 = scalar_lea.vmem [#allocation10], %s1470_s1  ;;  %s1508_s29 = sshll.u32 %s2100_s28, 12 }
  0x67   : > { %2007 = vsyncadd (%p2507_p2), [#allocation9], 4294966272  ;;  %1581 = vmatprep.subr.bf16.mxu0 %v1824_v0  ;;  %1725 = vmatprep.subr.bf16.mxu1 %v1824_v0  ;;  %v1827_v3 = vld [vmem:[#allocation5 + $0x20] sm:$0xff]   ;;  %v345_v5 = vld [vmem:[%s2220_s19 + $0x8] sm:$0xff]  ;;  %s1358_s12 = sshll.u32 %s2368_s21, 4  ;;  %s2434_s1 = scalar_lea.hbm %s2488_s7, %s1508_s29  ;;  %s2436_s12 = int_to_ptr.vmem [resolvable:$true] %s1358_s12 }
  0x68   : > { %1582 = vmatpush3.bf16.msra.mxu0 %v1824_v0  ;;  %1733 = vmatpush3.bf16.msra.mxu1 %v1824_v0  ;;  %v344_v4 = vld [vmem:[%s2220_s19] sm:$0xff]  ;;  %v1828_v7 = vld [vmem:[#allocation5 + $0x18] sm:$0xff]   ;;  %v361_v9 = vld [vmem:[%s2220_s19 + $0x88] sm:$0xff]  ;;  %s1345_s18 = scalar_lea.sflag [#allocation4], %s2214_s16  ;;  %p2508_p6 = scmp.ne.s32.totalorder %s2500_s20, 0 }
  0x69   : > { %1583 = vmatprep.subr.bf16.mxu0 %v1825_v1  ;;  %1726 = vmatprep.subr.bf16.mxu1 %v1825_v1  ;;  %v376_v6 = vpack.c.bf16 %v345_v5, %v344_v4  ;;  %v360_v8 = vld [vmem:[%s2220_s19 + $0x80] sm:$0xff]  ;;  %v1829_v11 = vld [vmem:[#allocation5 + $0x10] sm:$0xff]   ;;  %v1830_v12 = vld [vmem:[#allocation5 + $0x8] sm:$0xff]   ;;  %s2036_s28 = smov [#allocation10]  }
  0x6a   : > { %v384_v10 = vpack.c.bf16 %v361_v9, %v360_v8  ;;  %v1831_v13 = vld [vmem:[#allocation5] sm:$0xff]   ;;  %v346_v14 = vld [vmem:[%s2220_s19 + $0x10] sm:$0xff]  ;;  %v347_v15 = vld [vmem:[%s2220_s19 + $0x18] sm:$0xff]  ;;  %s1958_s30 = sshll.u32 %s2036_s28, 4  ;;  %s1959_s30 = int_to_ptr.vmem [resolvable:$false] %s1958_s30 }
  0x6b   : > { %1597 = vmatprep.mubr.bf16.mxu0 %v376_v6  ;;  %v348_v16 = vld [vmem:[%s2220_s19 + $0x20] sm:$0xff]  ;;  %v349_v17 = vld [vmem:[%s2220_s19 + $0x28] sm:$0xff]  ;;  %v362_v18 = vld [vmem:[%s2220_s19 + $0x90] sm:$0xff]  ;;  %v377_v23 = vpack.c.bf16 %v347_v15, %v346_v14  ;;  %s1960_s9 = scalar_lea.vmem %s1959_s30, 8192  ;;  %p1961_p5 = scmp.lt.s32.totalorder %s2436_s12, %s1959_s30 }
  0x6c   : > { %1584 = vmatpush3.bf16.msra.mxu0 %v1825_v1  ;;  %1734 = vmatpush3.bf16.msra.mxu1 %v1825_v1  ;;  %v363_v19 = vld [vmem:[%s2220_s19 + $0x98] sm:$0xff]  ;;  %v364_v20 = vld [vmem:[%s2220_s19 + $0xa0] sm:$0xff]  ;;  %v365_v21 = vld [vmem:[%s2220_s19 + $0xa8] sm:$0xff]  ;;  %v378_v24 = vpack.c.bf16 %v349_v17, %v348_v16 }
  0x6d   : > { %1585 = vmatprep.subr.bf16.mxu0 %v1826_v2  ;;  %1727 = vmatprep.subr.bf16.mxu1 %v1826_v2  ;;  %v1832_v22 = vld [vmem:[#allocation7 + $0x38] sm:$0xff]   ;;  %v385_v25 = vpack.c.bf16 %v363_v19, %v362_v18  ;;  %v386_v26 = vpack.c.bf16 %v365_v21, %v364_v20  ;;  %v1833_v27 = vld [vmem:[#allocation7 + $0x30] sm:$0xff]   ;;  %v352_v30 = vld [vmem:[%s2220_s19 + $0x40] sm:$0xff] }
  0x6e   : > { %1613 = vmatprep.mubr.bf16.mxu1 %v384_v10  ;;  %v350_v28 = vld [vmem:[%s2220_s19 + $0x30] sm:$0xff]  ;;  %v351_v29 = vld [vmem:[%s2220_s19 + $0x38] sm:$0xff]  ;;  %v353_v31 = vld [vmem:[%s2220_s19 + $0x48] sm:$0xff] }
  0x6f   : > { %v366_v32 = vld [vmem:[%s2220_s19 + $0xb0] sm:$0xff]  ;;  %v367_v33 = vld [vmem:[%s2220_s19 + $0xb8] sm:$0xff]  ;;  %v368_v34 = vld [vmem:[%s2220_s19 + $0xc0] sm:$0xff]  ;;  %v379_v37 = vpack.c.bf16 %v351_v29, %v350_v28  ;;  %v380_v38 = vpack.c.bf16 %v353_v31, %v352_v30 }
  0x70   : > { %1586 = vmatpush3.bf16.msra.mxu0 %v1826_v2  ;;  %1735 = vmatpush3.bf16.msra.mxu1 %v1826_v2  ;;  %v369_v35 = vld [vmem:[%s2220_s19 + $0xc8] sm:$0xff]  ;;  %v387_v39 = vpack.c.bf16 %v367_v33, %v366_v32  ;;  %v1835_v41 = vld [vmem:[#allocation7 + $0x20] sm:$0xff]   ;;  %v354_v42 = vld [vmem:[%s2220_s19 + $0x50] sm:$0xff] }
  0x71   : > { %1587 = vmatprep.subr.bf16.mxu0 %v1827_v3  ;;  %1728 = vmatprep.subr.bf16.mxu1 %v1827_v3  ;;  %v1834_v36 = vld [vmem:[#allocation7 + $0x28] sm:$0xff]   ;;  %v388_v40 = vpack.c.bf16 %v369_v35, %v368_v34  ;;  %v355_v43 = vld [vmem:[%s2220_s19 + $0x58] sm:$0xff]  ;;  %v356_v44 = vld [vmem:[%s2220_s19 + $0x60] sm:$0xff] }
  0x72   : > { %v357_v45 = vld [vmem:[%s2220_s19 + $0x68] sm:$0xff]  ;;  %v370_v46 = vld [vmem:[%s2220_s19 + $0xd0] sm:$0xff]  ;;  %v371_v47 = vld [vmem:[%s2220_s19 + $0xd8] sm:$0xff]  ;;  %v381_v51 = vpack.c.bf16 %v355_v43, %v354_v42 }
  0x73   : > { %v372_v48 = vld [vmem:[%s2220_s19 + $0xe0] sm:$0xff]  ;;  %v373_v49 = vld [vmem:[%s2220_s19 + $0xe8] sm:$0xff]  ;;  %v1836_v50 = vld [vmem:[#allocation7 + $0x18] sm:$0xff]   ;;  %v382_v52 = vpack.c.bf16 %v357_v45, %v356_v44  ;;  %v389_v53 = vpack.c.bf16 %v371_v47, %v370_v46 }
  0x74   : > { %1588 = vmatpush3.bf16.msra.mxu0 %v1827_v3  ;;  %1736 = vmatpush3.bf16.msra.mxu1 %v1827_v3  ;;  %v390_v54 = vpack.c.bf16 %v373_v49, %v372_v48  ;;  %v358_v55 = vld [vmem:[%s2220_s19 + $0x70] sm:$0xff]  ;;  %v359_v56 = vld [vmem:[%s2220_s19 + $0x78] sm:$0xff]  ;;  %v1838_v62 = vld [vmem:[#allocation7 + $0x8] sm:$0xff]  }
  0x75   : > { %1589 = vmatprep.subr.bf16.mxu0 %v1828_v7  ;;  %1729 = vmatprep.subr.bf16.mxu1 %v1828_v7  ;;  %v374_v57 = vld [vmem:[%s2220_s19 + $0xf0] sm:$0xff]  ;;  %v375_v58 = vld [vmem:[%s2220_s19 + $0xf8] sm:$0xff]  ;;  %v383_v59 = vpack.c.bf16 %v359_v56, %v358_v55  ;;  %v1839_v63 = vld [vmem:[#allocation7] sm:$0xff]   ;;  %s1954_s19 = scalar_lea.vmem %s2436_s12, 4096 }
  0x76   : > { %v391_v60 = vpack.c.bf16 %v375_v58, %v374_v57  ;;  %v1837_v61 = vld [vmem:[#allocation7 + $0x10] sm:$0xff]   ;;  %v1840_v0 = vld [vmem:[#allocation8 + $0x38] sm:$0xff]   ;;  %v1842_v2 = vld [vmem:[#allocation8 + $0x28] sm:$0xff]   ;;  %p1955_p4 = scmp.ne.s32.totalorder %s2436_s12, %s1954_s19  ;;  %p1962_p3 = scmp.lt.s32.totalorder %s1960_s9, %s1954_s19 }
  0x77   : > { %v1841_v1 = vld [vmem:[#allocation8 + $0x30] sm:$0xff]   ;;  %v1843_v3 = vld [vmem:[#allocation8 + $0x20] sm:$0xff]   ;;  %v1844_v4 = vld [vmem:[#allocation8 + $0x18] sm:$0xff]  }
  0x78   : > { %1590 = vmatpush3.bf16.msra.mxu0 %v1828_v7  ;;  %1737 = vmatpush3.bf16.msra.mxu1 %v1828_v7  ;;  %v2269_v6 = vld [vmem:[%s2483_s2] ss:$0 sm:$0xff]  ;;  %p1956_p12 = pnand %p1955_p4, %p2508_p6  ;;  %p1963_p7 = por %p1962_p3, %p1961_p5 }
  0x79   : > { %1591 = vmatprep.subr.bf16.mxu0 %v1829_v11  ;;  %1730 = vmatprep.subr.bf16.mxu1 %v1829_v11 }
  0x7a   : > { %p1957_p0 = pneg %p1956_p12 }
  0x7c   : > { %1592 = vmatpush3.bf16.msra.mxu0 %v1829_v11  ;;  %1738 = vmatpush3.bf16.msra.mxu1 %v1829_v11  ;;  %p1964_p9 = pnand %p1963_p7, %p1957_p0 }
  0x7d   : > { %1593 = vmatprep.subr.bf16.mxu0 %v1830_v12  ;;  %1731 = vmatprep.subr.bf16.mxu1 %v1830_v12 }
  0x80   : > { %1594 = vmatpush3.bf16.msra.mxu0 %v1830_v12  ;;  %1739 = vmatpush3.bf16.msra.mxu1 %v1830_v12 }
  0x81   : > { %1595 = vmatprep.subr.bf16.mxu0 %v1831_v13  ;;  %1732 = vmatprep.subr.bf16.mxu1 %v1831_v13 }
  0x84   : > { %1596 = vmatpush3.bf16.msra.mxu0 %v1831_v13  ;;  %1740 = vmatpush3.bf16.msra.mxu1 %v1831_v13 }
  0x85   : > { %1629 = vmatprep.subr.bf16.mxu1 %v1832_v22  ;;  %1677 = vmatprep.subr.bf16.mxu0 %v1840_v0 }
  0x87   : > { %1598 = vmatmul.mubr.bf16.vlgmr.msra.gmra.mxu0 %v377_v23  ;;  %1614 = vmatmul.mubr.bf16.vlgmr.msra.gmra.mxu1 %v385_v25 }
  0x88   : > { %1601 = vmatprep.mubr.bf16.mxu0 %v378_v24  ;;  %1617 = vmatprep.mubr.bf16.mxu1 %v386_v26 }
  0x89   : > { %1630 = vmatpush3.bf16.msra.mxu1 %v1832_v22  ;;  %1678 = vmatpush3.bf16.msra.mxu0 %v1840_v0 }
  0x8a   : > { %1631 = vmatprep.subr.bf16.mxu1 %v1833_v27  ;;  %1679 = vmatprep.subr.bf16.mxu0 %v1841_v1 }
  0x8d   : > { %1632 = vmatpush3.bf16.msra.mxu1 %v1833_v27  ;;  %1680 = vmatpush3.bf16.msra.mxu0 %v1841_v1 }
  0x8e   : > { %1633 = vmatprep.subr.bf16.mxu1 %v1834_v36  ;;  %1681 = vmatprep.subr.bf16.mxu0 %v1842_v2 }
  0x8f   : > { %1602 = vmatmul.mubr.bf16.gmra.mxu0 %v379_v37  ;;  %1618 = vmatmul.mubr.bf16.gmra.mxu1 %v387_v39 }
  0x90   : > { %1605 = vmatprep.mubr.bf16.mxu0 %v380_v38  ;;  %1621 = vmatprep.mubr.bf16.mxu1 %v388_v40 }
  0x91   : > { %1634 = vmatpush3.bf16.msra.mxu1 %v1834_v36  ;;  %1682 = vmatpush3.bf16.msra.mxu0 %v1842_v2 }
  0x92   : > { %1635 = vmatprep.subr.bf16.mxu1 %v1835_v41  ;;  %1683 = vmatprep.subr.bf16.mxu0 %v1843_v3 }
  0x95   : > { %1636 = vmatpush3.bf16.msra.mxu1 %v1835_v41  ;;  %1684 = vmatpush3.bf16.msra.mxu0 %v1843_v3 }
  0x96   : > { %1637 = vmatprep.subr.bf16.mxu1 %v1836_v50  ;;  %1685 = vmatprep.subr.bf16.mxu0 %v1844_v4 }
  0x97   : > { %1606 = vmatmul.mubr.bf16.gmra.mxu0 %v381_v51  ;;  %1622 = vmatmul.mubr.bf16.gmra.mxu1 %v389_v53 }
  0x98   : > { %1609 = vmatprep.mubr.bf16.mxu0 %v382_v52  ;;  %1625 = vmatprep.mubr.bf16.mxu1 %v390_v54 }
  0x99   : > { %1638 = vmatpush3.bf16.msra.mxu1 %v1836_v50  ;;  %1686 = vmatpush3.bf16.msra.mxu0 %v1844_v4 }
  0x9a   : > { %1639 = vmatprep.subr.bf16.mxu1 %v1837_v61 }
  0x9d   : > { %1640 = vmatpush3.bf16.msra.mxu1 %v1837_v61 }
  0x9e   : > { %1641 = vmatprep.subr.bf16.mxu1 %v1838_v62 }
  0x9f   : > { %1610 = vmatmul.mubr.bf16.gmra.mxu0 %v383_v59  ;;  %1626 = vmatmul.mubr.bf16.gmra.mxu1 %v391_v60 }
  0xa1   : > { %1642 = vmatpush3.bf16.msra.mxu1 %v1838_v62 }
  0xa2   : > { %1643 = vmatprep.subr.bf16.mxu1 %v1839_v63 }
  0xa5   : > { %1644 = vmatpush3.bf16.msra.mxu1 %v1839_v63 }
 0x147   : > { %v1599_v5 = vpop.f32.mrf.mxu0  ;;  %v2271_v7 = vpop.f32.mrf.mxu1 }
 0x148   : > { %v506_v11 = vadd.f32 %v1599_v5, %v2269_v6 }
 0x149   : > { %v497_v8 = vpop.f32.mrf.mxu0  ;;  %v561_v10 = vpop.f32.mrf.mxu1 }
 0x14a   : > { %v498_v9 = vadd.f32 %v2269_v6, %v497_v8  ;;  %v626_v20 = vmul.f32 0.01, %v506_v11  ;;  %v562_v3 = vadd.f32 %v2269_v6, %v561_v10 }
 0x14b   : > { %v1600_v12 = vpop.f32.mrf.mxu0  ;;  %v2276_v14 = vpop.f32.mrf.mxu1 }
 0x14c   : > { %v509_v13 = vadd.f32 %v1600_v12, %v2269_v6  ;;  %v624_v16 = vmul.f32 0.01, %v498_v9  ;;  %v658_v30 = vmax.f32 %v506_v11, %v626_v20 }
 0x14d   : > { %v500_v15 = vpop.f32.mrf.mxu0  ;;  %v564_v19 = vpop.f32.mrf.mxu1 }
 0x14e   : > { %v627_v17 = vmul.f32 0.01, %v509_v13  ;;  %v501_v18 = vadd.f32 %v2269_v6, %v500_v15  ;;  %v656_v26 = vmax.f32 %v498_v9, %v624_v16  ;;  %v565_v4 = vadd.f32 %v2269_v6, %v564_v19 }
 0x14f   : > { %v1603_v21 = vpop.f32.mrf.mxu0  ;;  %v2279_v23 = vpop.f32.mrf.mxu1 }
 0x150   : > { %v625_v22 = vmul.f32 0.01, %v501_v18  ;;  %v659_v24 = vmax.f32 %v509_v13, %v627_v17  ;;  %v522_v31 = vadd.f32 %v1603_v21, %v2269_v6  ;;  %v641_v21 = vmul.f32 0.01, %v565_v4 }
 0x151   : > { %v513_v25 = vpop.f32.mrf.mxu0  ;;  %v2282_v29 = vpop.f32.mrf.mxu1 }
 0x152   : > { %v657_v27 = vmax.f32 %v501_v18, %v625_v22  ;;  %v514_v28 = vadd.f32 %v2269_v6, %v513_v25  ;;  %v689_v36 = vpack.c.bf16 %v659_v24, %v658_v30  ;;  %v630_v41 = vmul.f32 0.01, %v522_v31 }
 0x153   : > { %v1604_v32 = vpop.f32.mrf.mxu0  ;;  %v2286_v35 = vpop.f32.mrf.mxu1  ;;  %v640_v18 = vmul.f32 0.01, %v562_v3 }
 0x154   : > { %v525_v33 = vadd.f32 %v1604_v32, %v2269_v6  ;;  %v688_v34 = vpack.c.bf16 %v657_v27, %v656_v26  ;;  %v628_v38 = vmul.f32 0.01, %v514_v28  ;;  %v662_v50 = vmax.f32 %v522_v31, %v630_v41 }
 0x155   : > { %v516_v37 = vpop.f32.mrf.mxu0  ;;  %v580_v43 = vpop.f32.mrf.mxu1  ;;  %v570_v27 = vadd.f32 %v2271_v7, %v2269_v6  ;;  %v672_v30 = vmax.f32 %v562_v3, %v640_v18  ;;  %v573_v32 = vadd.f32 %v2276_v14, %v2269_v6 }
 0x156   : > { %v631_v39 = vmul.f32 0.01, %v525_v33  ;;  %v517_v40 = vadd.f32 %v2269_v6, %v516_v37  ;;  %1645 = vmatprep.mubr.bf16.mxu1 %v688_v34  ;;  %v660_v47 = vmax.f32 %v514_v28, %v628_v38  ;;  %v578_v37 = vadd.f32 %v2269_v6, %v2282_v29 }
 0x157   : > { %v1607_v42 = vpop.f32.mrf.mxu0  ;;  %1646 = vmatmul.mubr.bf16.vlgmr.msra.gmra.mxu1 %v689_v36  ;;  %v2291_v53 = vpop.f32.mrf.mxu1  ;;  %v581_v38 = vadd.f32 %v2269_v6, %v580_v43  ;;  %v586_v29 = vadd.f32 %v2279_v23, %v2269_v6  ;;  %v589_v43 = vadd.f32 %v2286_v35, %v2269_v6 }
 0x158   : > { %v629_v44 = vmul.f32 0.01, %v517_v40  ;;  %v663_v45 = vmax.f32 %v525_v33, %v631_v39  ;;  %v538_v51 = vadd.f32 %v1607_v42, %v2269_v6  ;;  %v673_v33 = vmax.f32 %v565_v4, %v641_v21 }
 0x159   : > { %v529_v46 = vpop.f32.mrf.mxu0  ;;  %v593_v63 = vpop.f32.mrf.mxu1  ;;  %v642_v42 = vmul.f32 0.01, %v570_v27  ;;  %v602_v35 = vadd.f32 %v2291_v53, %v2269_v6 }
 0x15a   : > { %v661_v48 = vmax.f32 %v517_v40, %v629_v44  ;;  %v530_v49 = vadd.f32 %v2269_v6, %v529_v46  ;;  %v691_v57 = vpack.c.bf16 %v663_v45, %v662_v50  ;;  %v634_v61 = vmul.f32 0.01, %v538_v51 }
 0x15b   : > { %v1608_v52 = vpop.f32.mrf.mxu0  ;;  %v1624_v15 = vpop.f32.mrf.mxu1  ;;  %v643_v44 = vmul.f32 0.01, %v573_v32  ;;  %v644_v45 = vmul.f32 0.01, %v578_v37  ;;  %v645_v46 = vmul.f32 0.01, %v581_v38 }
 0x15c   : > { %v541_v54 = vadd.f32 %v1608_v52, %v2269_v6  ;;  %v690_v55 = vpack.c.bf16 %v661_v48, %v660_v47  ;;  %v632_v58 = vmul.f32 0.01, %v530_v49  ;;  %v666_v11 = vmax.f32 %v538_v51, %v634_v61 }
 0x15d   : > { %v532_v56 = vpop.f32.mrf.mxu0  ;;  %v596_v26 = vpop.f32.mrf.mxu1  ;;  %v696_v47 = vpack.c.bf16 %v673_v33, %v672_v30  ;;  %v674_v48 = vmax.f32 %v570_v27, %v642_v42  ;;  %v676_v50 = vmax.f32 %v578_v37, %v644_v45  ;;  %v677_v51 = vmax.f32 %v581_v38, %v645_v46  ;;  %v1845_v27 = vld [vmem:[#allocation8 + $0x10] sm:$0xff]   ;;  %v1847_v30 = vld [vmem:[#allocation8] sm:$0xff]  }
 0x15e   : > { %v635_v59 = vmul.f32 0.01, %v541_v54  ;;  %v533_v60 = vadd.f32 %v2269_v6, %v532_v56  ;;  %1649 = vmatprep.mubr.bf16.mxu1 %v690_v55  ;;  %v664_v5 = vmax.f32 %v530_v49, %v632_v58  ;;  %v675_v49 = vmax.f32 %v573_v32, %v643_v44  ;;  %1687 = vmatprep.subr.bf16.mxu0 %v1845_v27 }
 0x15f   : > { %v1611_v62 = vpop.f32.mrf.mxu0  ;;  %1650 = vmatmul.mubr.bf16.gmra.mxu1 %v691_v57  ;;  %v1627_v40 = vpop.f32.mrf.mxu1  ;;  %v594_v52 = vadd.f32 %v2269_v6, %v593_v63  ;;  %v646_v56 = vmul.f32 0.01, %v586_v29  ;;  %v647_v57 = vmul.f32 0.01, %v589_v43  ;;  %v698_v61 = vpack.c.bf16 %v677_v51, %v676_v50  ;;  %1688 = vmatpush3.bf16.msra.mxu0 %v1845_v27 }
 0x160   : > { %v633_v0 = vmul.f32 0.01, %v533_v60  ;;  %v667_v1 = vmax.f32 %v541_v54, %v635_v59  ;;  %v554_v12 = vadd.f32 %v1611_v62, %v2269_v6  ;;  %v597_v54 = vadd.f32 %v2269_v6, %v596_v26 }
 0x161   : > { %v545_v2 = vpop.f32.mrf.mxu0  ;;  %v609_v14 = vpop.f32.mrf.mxu1  ;;  %v697_v58 = vpack.c.bf16 %v675_v49, %v674_v48  ;;  %v648_v59 = vmul.f32 0.01, %v594_v52  ;;  %v678_v23 = vmax.f32 %v586_v29, %v646_v56  ;;  %v618_v53 = vadd.f32 %v1627_v40, %v2269_v6 }
 0x162   : > { %v665_v8 = vmax.f32 %v533_v60, %v633_v0  ;;  %v546_v9 = vadd.f32 %v2269_v6, %v545_v2  ;;  %v693_v22 = vpack.c.bf16 %v667_v1, %v666_v11  ;;  %v638_v25 = vmul.f32 0.01, %v554_v12 }
 0x163   : > { %v1612_v13 = vpop.f32.mrf.mxu0  ;;  %v1628_v55 = vpop.f32.mrf.mxu1  ;;  %v649_v60 = vmul.f32 0.01, %v597_v54  ;;  %v679_v0 = vmax.f32 %v589_v43, %v647_v57  ;;  %v605_v1 = vadd.f32 %v1624_v15, %v2269_v6  ;;  %v680_v63 = vmax.f32 %v594_v52, %v648_v59 }
 0x164   : > { %v557_v16 = vadd.f32 %v1612_v13, %v2269_v6  ;;  %v692_v17 = vpack.c.bf16 %v665_v8, %v664_v5  ;;  %v636_v24 = vmul.f32 0.01, %v546_v9  ;;  %v670_v39 = vmax.f32 %v554_v12, %v638_v25 }
 0x165   : > { %v548_v20 = vpop.f32.mrf.mxu0  ;;  %v612_v62 = vpop.f32.mrf.mxu1  ;;  %v681_v2 = vmax.f32 %v597_v54, %v649_v60  ;;  %v610_v3 = vadd.f32 %v2269_v6, %v609_v14  ;;  %v650_v5 = vmul.f32 0.01, %v602_v35  ;;  %v651_v8 = vmul.f32 0.01, %v605_v1 }
 0x166   : > { %v639_v10 = vmul.f32 0.01, %v557_v16  ;;  %v549_v19 = vadd.f32 %v2269_v6, %v548_v20  ;;  %1653 = vmatprep.mubr.bf16.mxu1 %v692_v17  ;;  %v668_v34 = vmax.f32 %v546_v9, %v636_v24  ;;  %v613_v4 = vadd.f32 %v2269_v6, %v612_v62 }
 0x167   : > { %1654 = vmatmul.mubr.bf16.gmra.mxu1 %v693_v22  ;;  %v699_v9 = vpack.c.bf16 %v679_v0, %v678_v23  ;;  %v652_v11 = vmul.f32 0.01, %v610_v3  ;;  %v700_v13 = vpack.c.bf16 %v681_v2, %v680_v63  ;;  %v683_v17 = vmax.f32 %v605_v1, %v651_v8 }
 0x168   : > { %v637_v28 = vmul.f32 0.01, %v549_v19  ;;  %v671_v31 = vmax.f32 %v557_v16, %v639_v10  ;;  %v653_v12 = vmul.f32 0.01, %v613_v4  ;;  %v682_v16 = vmax.f32 %v602_v35, %v650_v5 }
 0x169   : > { %v621_v15 = vadd.f32 %v1628_v55, %v2269_v6  ;;  %v684_v18 = vmax.f32 %v610_v3, %v652_v11  ;;  %v654_v21 = vmul.f32 0.01, %v618_v53 }
 0x16a   : > { %v669_v36 = vmax.f32 %v549_v19, %v637_v28  ;;  %v695_v7 = vpack.c.bf16 %v671_v31, %v670_v39  ;;  %v685_v20 = vmax.f32 %v613_v4, %v653_v12  ;;  %v701_v24 = vpack.c.bf16 %v683_v17, %v682_v16  ;;  %v1846_v28 = vld [vmem:[#allocation8 + $0x8] sm:$0xff]   ;;  %v2324_v31 = vld [vmem:[%s2485_s4] ss:$0 sm:$0xff] }
 0x16b   : > { %v655_v22 = vmul.f32 0.01, %v621_v15  ;;  %v686_v19 = vmax.f32 %v618_v53, %v654_v21  ;;  %1689 = vmatprep.subr.bf16.mxu0 %v1846_v28 }
 0x16c   : > { %v694_v41 = vpack.c.bf16 %v669_v36, %v668_v34  ;;  %v702_v10 = vpack.c.bf16 %v685_v20, %v684_v18  ;;  %1690 = vmatpush3.bf16.msra.mxu0 %v1846_v28 }
 0x16d   : > { %v687_v25 = vmax.f32 %v621_v15, %v655_v22  ;;  %1691 = vmatprep.subr.bf16.mxu0 %v1847_v30 }
 0x16e   : > { %1657 = vmatprep.mubr.bf16.mxu1 %v694_v41 }
 0x16f   : > { %1658 = vmatmul.mubr.bf16.gmra.mxu1 %v695_v7  ;;  %v703_v26 = vpack.c.bf16 %v687_v25, %v686_v19 }
 0x170   : > { %1661 = vmatprep.mubr.bf16.mxu1 %v696_v47  ;;  %1692 = vmatpush3.bf16.msra.mxu0 %v1847_v30 }
 0x177   : > { %1662 = vmatmul.mubr.bf16.gmra.mxu1 %v697_v58 }
 0x178   : > { %1665 = vmatprep.mubr.bf16.mxu1 %v698_v61 }
 0x17f   : > { %1666 = vmatmul.mubr.bf16.gmra.mxu1 %v699_v9 }
 0x180   : > { %1669 = vmatprep.mubr.bf16.mxu1 %v700_v13 }
 0x187   : > { %1670 = vmatmul.mubr.bf16.gmra.mxu1 %v701_v24 }
 0x188   : > { %1673 = vmatprep.mubr.bf16.mxu1 %v702_v10 }
 0x18f   : > { %1674 = vmatmul.mubr.bf16.gmra.mxu1 %v703_v26 }
 0x217   : > { %v1647_v6 = vpop.f32.mrf.mxu1 }
 0x218   : > { %v818_v34 = vadd.f32 %v1647_v6, %v2324_v31 }
 0x219   : > { %v809_v32 = vpop.f32.mrf.mxu1 }
 0x21a   : > { %v810_v33 = vadd.f32 %v2324_v31, %v809_v32  ;;  %v938_v42 = vmul.f32 0.01, %v818_v34 }
 0x21b   : > { %v1648_v36 = vpop.f32.mrf.mxu1 }
 0x21c   : > { %v821_v37 = vadd.f32 %v1648_v36, %v2324_v31  ;;  %v936_v39 = vmul.f32 0.01, %v810_v33  ;;  %v970_v49 = vmax.f32 %v818_v34, %v938_v42 }
 0x21d   : > { %v812_v38 = vpop.f32.mrf.mxu1 }
 0x21e   : > { %v939_v40 = vmul.f32 0.01, %v821_v37  ;;  %v813_v41 = vadd.f32 %v2324_v31, %v812_v38  ;;  %v968_v47 = vmax.f32 %v810_v33, %v936_v39 }
 0x21f   : > { %v1651_v44 = vpop.f32.mrf.mxu1 }
 0x220   : > { %v937_v7 = vmul.f32 0.01, %v813_v41  ;;  %v971_v45 = vmax.f32 %v821_v37, %v939_v40  ;;  %v834_v29 = vadd.f32 %v1651_v44, %v2324_v31 }
 0x221   : > { %v825_v46 = vpop.f32.mrf.mxu1 }
 0x222   : > { %v969_v14 = vmax.f32 %v813_v41, %v937_v7  ;;  %v826_v48 = vadd.f32 %v2324_v31, %v825_v46  ;;  %v1001_v52 = vpack.c.bf16 %v971_v45, %v970_v49  ;;  %v942_v58 = vmul.f32 0.01, %v834_v29 }
 0x223   : > { %v1652_v43 = vpop.f32.mrf.mxu1 }
 0x224   : > { %v837_v50 = vadd.f32 %v1652_v43, %v2324_v31  ;;  %v1000_v51 = vpack.c.bf16 %v969_v14, %v968_v47  ;;  %v940_v55 = vmul.f32 0.01, %v826_v48  ;;  %v974_v1 = vmax.f32 %v834_v29, %v942_v58 }
 0x225   : > { %v828_v54 = vpop.f32.mrf.mxu1 }
 0x226   : > { %v943_v56 = vmul.f32 0.01, %v837_v50  ;;  %v829_v57 = vadd.f32 %v2324_v31, %v828_v54  ;;  %1693 = vmatprep.mubr.bf16.mxu0 %v1000_v51  ;;  %v972_v23 = vmax.f32 %v826_v48, %v940_v55 }
 0x227   : > { %v1655_v59 = vpop.f32.mrf.mxu1  ;;  %1694 = vmatmul.mubr.bf16.vlgmr.msra.gmra.mxu0 %v1001_v52 }
 0x228   : > { %v941_v60 = vmul.f32 0.01, %v829_v57  ;;  %v975_v61 = vmax.f32 %v837_v50, %v943_v56  ;;  %v850_v63 = vadd.f32 %v1655_v59, %v2324_v31 }
 0x229   : > { %v841_v62 = vpop.f32.mrf.mxu1 }
 0x22a   : > { %v973_v0 = vmax.f32 %v829_v57, %v941_v60  ;;  %v842_v35 = vadd.f32 %v2324_v31, %v841_v62  ;;  %v1003_v8 = vpack.c.bf16 %v975_v61, %v974_v1  ;;  %v946_v13 = vmul.f32 0.01, %v850_v63 }
 0x22b   : > { %v1656_v2 = vpop.f32.mrf.mxu1 }
 0x22c   : > { %v853_v3 = vadd.f32 %v1656_v2, %v2324_v31  ;;  %v1002_v4 = vpack.c.bf16 %v973_v0, %v972_v23  ;;  %v944_v9 = vmul.f32 0.01, %v842_v35  ;;  %v978_v22 = vmax.f32 %v850_v63, %v946_v13 }
 0x22d   : > { %v844_v5 = vpop.f32.mrf.mxu1 }
 0x22e   : > { %v947_v11 = vmul.f32 0.01, %v853_v3  ;;  %v845_v12 = vadd.f32 %v2324_v31, %v844_v5  ;;  %1697 = vmatprep.mubr.bf16.mxu0 %v1002_v4  ;;  %v976_v18 = vmax.f32 %v842_v35, %v944_v9 }
 0x22f   : > { %v1659_v16 = vpop.f32.mrf.mxu1  ;;  %1698 = vmatmul.mubr.bf16.gmra.mxu0 %v1003_v8 }
 0x230   : > { %v945_v17 = vmul.f32 0.01, %v845_v12  ;;  %v979_v53 = vmax.f32 %v853_v3, %v947_v11  ;;  %v866_v24 = vadd.f32 %v1659_v16, %v2324_v31 }
 0x231   : > { %v857_v15 = vpop.f32.mrf.mxu1 }
 0x232   : > { %v977_v20 = vmax.f32 %v845_v12, %v945_v17  ;;  %v858_v21 = vadd.f32 %v2324_v31, %v857_v15  ;;  %v1005_v27 = vpack.c.bf16 %v979_v53, %v978_v22  ;;  %v950_v32 = vmul.f32 0.01, %v866_v24 }
 0x233   : > { %v1660_v10 = vpop.f32.mrf.mxu1 }
 0x234   : > { %v869_v19 = vadd.f32 %v1660_v10, %v2324_v31  ;;  %v1004_v25 = vpack.c.bf16 %v977_v20, %v976_v18  ;;  %v948_v28 = vmul.f32 0.01, %v858_v21  ;;  %v982_v41 = vmax.f32 %v866_v24, %v950_v32 }
 0x235   : > { %v860_v26 = vpop.f32.mrf.mxu1 }
 0x236   : > { %v951_v30 = vmul.f32 0.01, %v869_v19  ;;  %v861_v6 = vadd.f32 %v2324_v31, %v860_v26  ;;  %1701 = vmatprep.mubr.bf16.mxu0 %v1004_v25  ;;  %v980_v38 = vmax.f32 %v858_v21, %v948_v28 }
 0x237   : > { %v1663_v33 = vpop.f32.mrf.mxu1  ;;  %1702 = vmatmul.mubr.bf16.gmra.mxu0 %v1005_v27 }
 0x238   : > { %v949_v34 = vmul.f32 0.01, %v861_v6  ;;  %v983_v36 = vmax.f32 %v869_v19, %v951_v30  ;;  %v882_v42 = vadd.f32 %v1663_v33, %v2324_v31 }
 0x239   : > { %v873_v37 = vpop.f32.mrf.mxu1 }
 0x23a   : > { %v981_v39 = vmax.f32 %v861_v6, %v949_v34  ;;  %v874_v40 = vadd.f32 %v2324_v31, %v873_v37  ;;  %v1007_v47 = vpack.c.bf16 %v983_v36, %v982_v41  ;;  %v954_v29 = vmul.f32 0.01, %v882_v42 }
 0x23b   : > { %v1664_v44 = vpop.f32.mrf.mxu1 }
 0x23c   : > { %v885_v7 = vadd.f32 %v1664_v44, %v2324_v31  ;;  %v1006_v45 = vpack.c.bf16 %v981_v39, %v980_v38  ;;  %v952_v14 = vmul.f32 0.01, %v874_v40  ;;  %v986_v57 = vmax.f32 %v882_v42, %v954_v29 }
 0x23d   : > { %v876_v46 = vpop.f32.mrf.mxu1 }
 0x23e   : > { %v955_v48 = vmul.f32 0.01, %v885_v7  ;;  %v877_v49 = vadd.f32 %v2324_v31, %v876_v46  ;;  %1705 = vmatprep.mubr.bf16.mxu0 %v1006_v45  ;;  %v984_v54 = vmax.f32 %v874_v40, %v952_v14 }
 0x23f   : > { %v1667_v43 = vpop.f32.mrf.mxu1  ;;  %1706 = vmatmul.mubr.bf16.gmra.mxu0 %v1007_v47 }
 0x240   : > { %v953_v50 = vmul.f32 0.01, %v877_v49  ;;  %v987_v51 = vmax.f32 %v885_v7, %v955_v48  ;;  %v898_v58 = vadd.f32 %v1667_v43, %v2324_v31 }
 0x241   : > { %v889_v52 = vpop.f32.mrf.mxu1 }
 0x242   : > { %v985_v55 = vmax.f32 %v877_v49, %v953_v50  ;;  %v890_v56 = vadd.f32 %v2324_v31, %v889_v52  ;;  %v1009_v23 = vpack.c.bf16 %v987_v51, %v986_v57  ;;  %v958_v63 = vmul.f32 0.01, %v898_v58  ;;  %v2361_v49 = vld [vmem:[%s2487_s6] ss:$0 sm:$0xff] }
 0x243   : > { %v1668_v59 = vpop.f32.mrf.mxu1 }
 0x244   : > { %v901_v60 = vadd.f32 %v1668_v59, %v2324_v31  ;;  %v1008_v61 = vpack.c.bf16 %v985_v55, %v984_v54  ;;  %v956_v0 = vmul.f32 0.01, %v890_v56  ;;  %v990_v12 = vmax.f32 %v898_v58, %v958_v63 }
 0x245   : > { %v892_v62 = vpop.f32.mrf.mxu1 }
 0x246   : > { %v959_v35 = vmul.f32 0.01, %v901_v60  ;;  %v893_v1 = vadd.f32 %v2324_v31, %v892_v62  ;;  %1709 = vmatprep.mubr.bf16.mxu0 %v1008_v61  ;;  %v988_v8 = vmax.f32 %v890_v56, %v956_v0 }
 0x247   : > { %v1671_v2 = vpop.f32.mrf.mxu1  ;;  %1710 = vmatmul.mubr.bf16.gmra.mxu0 %v1009_v23 }
 0x248   : > { %v957_v3 = vmul.f32 0.01, %v893_v1  ;;  %v991_v4 = vmax.f32 %v901_v60, %v959_v35  ;;  %v914_v13 = vadd.f32 %v1671_v2, %v2324_v31 }
 0x249   : > { %v905_v5 = vpop.f32.mrf.mxu1 }
 0x24a   : > { %v989_v9 = vmax.f32 %v893_v1, %v957_v3  ;;  %v906_v11 = vadd.f32 %v2324_v31, %v905_v5  ;;  %v1011_v18 = vpack.c.bf16 %v991_v4, %v990_v12  ;;  %v962_v24 = vmul.f32 0.01, %v914_v13 }
 0x24b   : > { %v1672_v16 = vpop.f32.mrf.mxu1 }
 0x24c   : > { %v917_v17 = vadd.f32 %v1672_v16, %v2324_v31  ;;  %v1010_v53 = vpack.c.bf16 %v989_v9, %v988_v8  ;;  %v960_v20 = vmul.f32 0.01, %v906_v11  ;;  %v994_v6 = vmax.f32 %v914_v13, %v962_v24 }
 0x24d   : > { %v908_v15 = vpop.f32.mrf.mxu1 }
 0x24e   : > { %v963_v21 = vmul.f32 0.01, %v917_v17  ;;  %v909_v22 = vadd.f32 %v2324_v31, %v908_v15  ;;  %1713 = vmatprep.mubr.bf16.mxu0 %v1010_v53  ;;  %v992_v27 = vmax.f32 %v906_v11, %v960_v20 }
 0x24f   : > { %v1675_v10 = vpop.f32.mrf.mxu1  ;;  %1714 = vmatmul.mubr.bf16.gmra.mxu0 %v1011_v18 }
 0x250   : > { %v961_v19 = vmul.f32 0.01, %v909_v22  ;;  %v995_v25 = vmax.f32 %v917_v17, %v963_v21  ;;  %v930_v32 = vadd.f32 %v1675_v10, %v2324_v31 }
 0x251   : > { %v921_v26 = vpop.f32.mrf.mxu1 }
 0x252   : > { %v993_v28 = vmax.f32 %v909_v22, %v961_v19  ;;  %v922_v30 = vadd.f32 %v2324_v31, %v921_v26  ;;  %v1013_v38 = vpack.c.bf16 %v995_v25, %v994_v6  ;;  %v966_v42 = vmul.f32 0.01, %v930_v32 }
 0x253   : > { %v1676_v33 = vpop.f32.mrf.mxu1 }
 0x254   : > { %v933_v34 = vadd.f32 %v1676_v33, %v2324_v31  ;;  %v1012_v36 = vpack.c.bf16 %v993_v28, %v992_v27  ;;  %v964_v39 = vmul.f32 0.01, %v922_v30  ;;  %v998_v47 = vmax.f32 %v930_v32, %v966_v42 }
 0x255   : > { %v924_v37 = vpop.f32.mrf.mxu1 }
 0x256   : > { %v967_v40 = vmul.f32 0.01, %v933_v34  ;;  %v925_v41 = vadd.f32 %v2324_v31, %v924_v37  ;;  %1717 = vmatprep.mubr.bf16.mxu0 %v1012_v36  ;;  %v996_v45 = vmax.f32 %v922_v30, %v964_v39 }
 0x257   : > { %1718 = vmatmul.mubr.bf16.gmra.mxu0 %v1013_v38 }
 0x258   : > { %v965_v44 = vmul.f32 0.01, %v925_v41  ;;  %v999_v7 = vmax.f32 %v933_v34, %v967_v40 }
 0x25a   : > { %v997_v46 = vmax.f32 %v925_v41, %v965_v44  ;;  %v1015_v48 = vpack.c.bf16 %v999_v7, %v998_v47 }
 0x25c   : > { %v1014_v14 = vpack.c.bf16 %v997_v46, %v996_v45 }
 0x25e   : > { %1721 = vmatprep.mubr.bf16.mxu0 %v1014_v14 }
 0x25f   : > { %1722 = vmatmul.mubr.bf16.gmra.mxu0 %v1015_v48 }
 0x2e7   : > { %v1695_v29 = vpop.f32.mrf.mxu0 }
 0x2e8   : > { %v1130_v31 = vadd.f32 %v1695_v29, %v2361_v49 }
 0x2e9   : > { %v1121_v43 = vpop.f32.mrf.mxu0 }
 0x2ea   : > { %v1250_v50 = vmul.f32 0.01, %v1130_v31  ;;  %v1122_v51 = vadd.f32 %v2361_v49, %v1121_v43 }
 0x2eb   : > { %v1696_v52 = vpop.f32.mrf.mxu0 }
 0x2ec   : > { %v1282_v54 = vmax.f32 %v1130_v31, %v1250_v50  ;;  %v1248_v55 = vmul.f32 0.01, %v1122_v51  ;;  %v1133_v56 = vadd.f32 %v1696_v52, %v2361_v49 }
 0x2ed   : > { %v1124_v57 = vpop.f32.mrf.mxu0 }
 0x2ee   : > { %1314 = vst [vmem:[%s2368_s21 + $0x10] sm:$0xff] %v1282_v54  ;;  %v1280_v58 = vmax.f32 %v1122_v51, %v1248_v55  ;;  %v1251_v59 = vmul.f32 0.01, %v1133_v56  ;;  %v1125_v60 = vadd.f32 %v2361_v49, %v1124_v57 }
 0x2ef   : > { %v1699_v61 = vpop.f32.mrf.mxu0 }
 0x2f0   : > { %1312 = vst [vmem:[%s2368_s21] sm:$0xff] %v1280_v58  ;;  %v1283_v62 = vmax.f32 %v1133_v56, %v1251_v59  ;;  %v1249_v23 = vmul.f32 0.01, %v1125_v60  ;;  %v1146_v0 = vadd.f32 %v1699_v61, %v2361_v49 }
 0x2f1   : > { %v1137_v35 = vpop.f32.mrf.mxu0 }
 0x2f2   : > { %1315 = vst [vmem:[%s2368_s21 + $0x18] sm:$0xff] %v1283_v62  ;;  %v1281_v1 = vmax.f32 %v1125_v60, %v1249_v23  ;;  %v1254_v63 = vmul.f32 0.01, %v1146_v0  ;;  %v1138_v2 = vadd.f32 %v2361_v49, %v1137_v35 }
 0x2f3   : > { %v1700_v3 = vpop.f32.mrf.mxu0 }
 0x2f4   : > { %1313 = vst [vmem:[%s2368_s21 + $0x8] sm:$0xff] %v1281_v1  ;;  %v1286_v4 = vmax.f32 %v1146_v0, %v1254_v63  ;;  %v1252_v5 = vmul.f32 0.01, %v1138_v2  ;;  %v1149_v8 = vadd.f32 %v1700_v3, %v2361_v49 }
 0x2f5   : > { %v1140_v9 = vpop.f32.mrf.mxu0 }
 0x2f6   : > { %1318 = vst [vmem:[%s2368_s21 + $0x30] sm:$0xff] %v1286_v4  ;;  %v1284_v11 = vmax.f32 %v1138_v2, %v1252_v5  ;;  %v1255_v12 = vmul.f32 0.01, %v1149_v8  ;;  %v1141_v13 = vadd.f32 %v2361_v49, %v1140_v9 }
 0x2f7   : > { %v1703_v16 = vpop.f32.mrf.mxu0 }
 0x2f8   : > { %1316 = vst [vmem:[%s2368_s21 + $0x20] sm:$0xff] %v1284_v11  ;;  %v1287_v17 = vmax.f32 %v1149_v8, %v1255_v12  ;;  %v1253_v53 = vmul.f32 0.01, %v1141_v13  ;;  %v1162_v15 = vadd.f32 %v1703_v16, %v2361_v49 }
 0x2f9   : > { %v1153_v18 = vpop.f32.mrf.mxu0 }
 0x2fa   : > { %1319 = vst [vmem:[%s2368_s21 + $0x38] sm:$0xff] %v1287_v17  ;;  %v1285_v20 = vmax.f32 %v1141_v13, %v1253_v53  ;;  %v1258_v21 = vmul.f32 0.01, %v1162_v15  ;;  %v1154_v22 = vadd.f32 %v2361_v49, %v1153_v18 }
 0x2fb   : > { %v1704_v24 = vpop.f32.mrf.mxu0 }
 0x2fc   : > { %1317 = vst [vmem:[%s2368_s21 + $0x28] sm:$0xff] %v1285_v20  ;;  %v1290_v10 = vmax.f32 %v1162_v15, %v1258_v21  ;;  %v1256_v19 = vmul.f32 0.01, %v1154_v22  ;;  %v1165_v25 = vadd.f32 %v1704_v24, %v2361_v49 }
 0x2fd   : > { %v1156_v26 = vpop.f32.mrf.mxu0 }
 0x2fe   : > { %1322 = vst [vmem:[%s2368_s21 + $0x50] sm:$0xff] %v1290_v10  ;;  %v1288_v27 = vmax.f32 %v1154_v22, %v1256_v19  ;;  %v1259_v28 = vmul.f32 0.01, %v1165_v25  ;;  %v1157_v30 = vadd.f32 %v2361_v49, %v1156_v26 }
 0x2ff   : > { %v1707_v6 = vpop.f32.mrf.mxu0 }
 0x300   : > { %1320 = vst [vmem:[%s2368_s21 + $0x40] sm:$0xff] %v1288_v27  ;;  %v1291_v32 = vmax.f32 %v1165_v25, %v1259_v28  ;;  %v1257_v33 = vmul.f32 0.01, %v1157_v30  ;;  %v1178_v34 = vadd.f32 %v1707_v6, %v2361_v49 }
 0x301   : > { %v1169_v36 = vpop.f32.mrf.mxu0 }
 0x302   : > { %1323 = vst [vmem:[%s2368_s21 + $0x58] sm:$0xff] %v1291_v32  ;;  %v1289_v37 = vmax.f32 %v1157_v30, %v1257_v33  ;;  %v1262_v38 = vmul.f32 0.01, %v1178_v34  ;;  %v1170_v39 = vadd.f32 %v2361_v49, %v1169_v36 }
 0x303   : > { %v1708_v40 = vpop.f32.mrf.mxu0 }
 0x304   : > { %1321 = vst [vmem:[%s2368_s21 + $0x48] sm:$0xff] %v1289_v37  ;;  %v1294_v41 = vmax.f32 %v1178_v34, %v1262_v38  ;;  %v1260_v42 = vmul.f32 0.01, %v1170_v39  ;;  %v1181_v44 = vadd.f32 %v1708_v40, %v2361_v49 }
 0x305   : > { %v1172_v7 = vpop.f32.mrf.mxu0 }
 0x306   : > { %1326 = vst [vmem:[%s2368_s21 + $0x70] sm:$0xff] %v1294_v41  ;;  %v1292_v45 = vmax.f32 %v1170_v39, %v1260_v42  ;;  %v1263_v46 = vmul.f32 0.01, %v1181_v44  ;;  %v1173_v47 = vadd.f32 %v2361_v49, %v1172_v7 }
 0x307   : > { %v1711_v14 = vpop.f32.mrf.mxu0 }
 0x308   : > { %1324 = vst [vmem:[%s2368_s21 + $0x60] sm:$0xff] %v1292_v45  ;;  %v1295_v48 = vmax.f32 %v1181_v44, %v1263_v46  ;;  %v1261_v29 = vmul.f32 0.01, %v1173_v47  ;;  %v1194_v31 = vadd.f32 %v1711_v14, %v2361_v49 }
 0x309   : > { %v1185_v43 = vpop.f32.mrf.mxu0 }
 0x30a   : > { %1327 = vst [vmem:[%s2368_s21 + $0x78] sm:$0xff] %v1295_v48  ;;  %v1293_v50 = vmax.f32 %v1173_v47, %v1261_v29  ;;  %v1266_v51 = vmul.f32 0.01, %v1194_v31  ;;  %v1186_v52 = vadd.f32 %v2361_v49, %v1185_v43 }
 0x30b   : > { %v1712_v54 = vpop.f32.mrf.mxu0 }
 0x30c   : > { %1325 = vst [vmem:[%s2368_s21 + $0x68] sm:$0xff] %v1293_v50  ;;  %v1298_v55 = vmax.f32 %v1194_v31, %v1266_v51  ;;  %v1264_v56 = vmul.f32 0.01, %v1186_v52  ;;  %v1197_v57 = vadd.f32 %v1712_v54, %v2361_v49 }
 0x30d   : > { %v1188_v58 = vpop.f32.mrf.mxu0 }
 0x30e   : > { %1330 = vst [vmem:[%s2368_s21 + $0x90] sm:$0xff] %v1298_v55  ;;  %v1296_v59 = vmax.f32 %v1186_v52, %v1264_v56  ;;  %v1267_v60 = vmul.f32 0.01, %v1197_v57  ;;  %v1189_v61 = vadd.f32 %v2361_v49, %v1188_v58 }
 0x30f   : > { %v1715_v62 = vpop.f32.mrf.mxu0 }
 0x310   : > { %1328 = vst [vmem:[%s2368_s21 + $0x80] sm:$0xff] %v1296_v59  ;;  %v1299_v23 = vmax.f32 %v1197_v57, %v1267_v60  ;;  %v1265_v0 = vmul.f32 0.01, %v1189_v61  ;;  %v1210_v35 = vadd.f32 %v1715_v62, %v2361_v49 }
 0x311   : > { %v1201_v1 = vpop.f32.mrf.mxu0 }
 0x312   : > { %1331 = vst [vmem:[%s2368_s21 + $0x98] sm:$0xff] %v1299_v23  ;;  %v1297_v63 = vmax.f32 %v1189_v61, %v1265_v0  ;;  %v1270_v2 = vmul.f32 0.01, %v1210_v35  ;;  %v1202_v3 = vadd.f32 %v2361_v49, %v1201_v1 }
 0x313   : > { %v1716_v4 = vpop.f32.mrf.mxu0 }
 0x314   : > { %1329 = vst [vmem:[%s2368_s21 + $0x88] sm:$0xff] %v1297_v63  ;;  %v1302_v5 = vmax.f32 %v1210_v35, %v1270_v2  ;;  %v1268_v8 = vmul.f32 0.01, %v1202_v3  ;;  %v1213_v9 = vadd.f32 %v1716_v4, %v2361_v49 }
 0x315   : > { %v1204_v11 = vpop.f32.mrf.mxu0 }
 0x316   : > { %1334 = vst [vmem:[%s2368_s21 + $0xb0] sm:$0xff] %v1302_v5  ;;  %v1300_v12 = vmax.f32 %v1202_v3, %v1268_v8  ;;  %v1271_v13 = vmul.f32 0.01, %v1213_v9  ;;  %v1205_v16 = vadd.f32 %v2361_v49, %v1204_v11 }
 0x317   : > { %v1719_v17 = vpop.f32.mrf.mxu0 }
 0x318   : > { %1332 = vst [vmem:[%s2368_s21 + $0xa0] sm:$0xff] %v1300_v12  ;;  %v1303_v53 = vmax.f32 %v1213_v9, %v1271_v13  ;;  %v1269_v15 = vmul.f32 0.01, %v1205_v16  ;;  %v1226_v18 = vadd.f32 %v1719_v17, %v2361_v49 }
 0x319   : > { %v1217_v20 = vpop.f32.mrf.mxu0 }
 0x31a   : > { %1335 = vst [vmem:[%s2368_s21 + $0xb8] sm:$0xff] %v1303_v53  ;;  %v1301_v21 = vmax.f32 %v1205_v16, %v1269_v15  ;;  %v1274_v22 = vmul.f32 0.01, %v1226_v18  ;;  %v1218_v24 = vadd.f32 %v2361_v49, %v1217_v20 }
 0x31b   : > { %v1720_v10 = vpop.f32.mrf.mxu0 }
 0x31c   : > { %1333 = vst [vmem:[%s2368_s21 + $0xa8] sm:$0xff] %v1301_v21  ;;  %v1306_v19 = vmax.f32 %v1226_v18, %v1274_v22  ;;  %v1272_v25 = vmul.f32 0.01, %v1218_v24  ;;  %v1229_v26 = vadd.f32 %v1720_v10, %v2361_v49 }
 0x31d   : > { %v1220_v27 = vpop.f32.mrf.mxu0 }
 0x31e   : > { %1338 = vst [vmem:[%s2368_s21 + $0xd0] sm:$0xff] %v1306_v19  ;;  %v1304_v28 = vmax.f32 %v1218_v24, %v1272_v25  ;;  %v1275_v30 = vmul.f32 0.01, %v1229_v26  ;;  %v1221_v6 = vadd.f32 %v2361_v49, %v1220_v27 }
 0x31f   : > { %v1723_v32 = vpop.f32.mrf.mxu0 }
 0x320   : > { %1336 = vst [vmem:[%s2368_s21 + $0xc0] sm:$0xff] %v1304_v28  ;;  %v1307_v33 = vmax.f32 %v1229_v26, %v1275_v30  ;;  %v1273_v34 = vmul.f32 0.01, %v1221_v6  ;;  %v1242_v36 = vadd.f32 %v1723_v32, %v2361_v49 }
 0x321   : > { %v1233_v37 = vpop.f32.mrf.mxu0 }
 0x322   : > { %1339 = vst [vmem:[%s2368_s21 + $0xd8] sm:$0xff] %v1307_v33  ;;  %v1305_v38 = vmax.f32 %v1221_v6, %v1273_v34  ;;  %v1278_v39 = vmul.f32 0.01, %v1242_v36  ;;  %v1234_v40 = vadd.f32 %v2361_v49, %v1233_v37 }
 0x323   : > { %v1724_v41 = vpop.f32.mrf.mxu0 }
 0x324   : > { %1337 = vst [vmem:[%s2368_s21 + $0xc8] sm:$0xff] %v1305_v38  ;;  %v1310_v42 = vmax.f32 %v1242_v36, %v1278_v39  ;;  %v1276_v44 = vmul.f32 0.01, %v1234_v40  ;;  %v1245_v7 = vadd.f32 %v1724_v41, %v2361_v49 }
 0x325   : > { %v1236_v45 = vpop.f32.mrf.mxu0 }
 0x326   : > { %1342 = vst [vmem:[%s2368_s21 + $0xf0] sm:$0xff] %v1310_v42  ;;  %v1308_v46 = vmax.f32 %v1234_v40, %v1276_v44  ;;  %v1279_v47 = vmul.f32 0.01, %v1245_v7  ;;  %v1237_v14 = vadd.f32 %v2361_v49, %v1236_v45 }
 0x328   : > { %1340 = vst [vmem:[%s2368_s21 + $0xe0] sm:$0xff] %v1308_v46  ;;  %v1311_v48 = vmax.f32 %v1245_v7, %v1279_v47  ;;  %v1277_v29 = vmul.f32 0.01, %v1237_v14 }
 0x32a   : > { %1343 = vst [vmem:[%s2368_s21 + $0xf8] sm:$0xff] %v1311_v48  ;;  %v1309_v31 = vmax.f32 %v1237_v14, %v1277_v29 }
 0x32c   : > { %1341 = vst [vmem:[%s2368_s21 + $0xe8] sm:$0xff] %v1309_v31 }
 0x32d   : > { %1967 = shalt.err (!%p1964_p9)
}
 0x32e   : > { %s1968_s23 = scalar_lea.hbm %s2434_s1, 4096  ;;  %s1972_s13 = scalar_lea.hbm %s2488_s7, 8192 }
 0x32f   : > { %p1969_p1 = scmp.ne.s32.totalorder %s2434_s1, %s1968_s23  ;;  %p1973_p11 = scmp.lt.s32.totalorder %s2434_s1, %s2488_s7 }
 0x330   : > { %p1974_p13 = scmp.lt.s32.totalorder %s1972_s13, %s1968_s23 }
 0x331   : > { %p1970_p8 = pnand %p1969_p1, %p2508_p6 }
 0x332   : > { %p1975_p2 = por %p1974_p13, %p1973_p11 }
 0x333   : > { %p1971_p10 = pneg %p1970_p8 }
 0x335   : > { %p1976_p4 = pnand %p1975_p2, %p1971_p10 }
 0x337   : > { %1979 = shalt.err (!%p1976_p4)
}
 0x338   : > { %s2037_s15 = smov 128   ;;  %s2038_s22 = smov 8  }
 0x339   : > { %1755 = dma.vmem_to_hbm [thread:$0]  (%p2508_p6), %s2436_s12, 4096, %s2434_s1, %s1345_s18, %s2037_s15, %s2037_s15, %s2038_s22  }
 0x33a PF: > { %s1373_s19 = sand.u32 1, %s2014_s24   ;;  %p2509_p12 = scmp.ne.s32.totalorder %s2495_s8, 0 }
 0x33b   : > { %p2510_p0 = scmp.ge.s32.totalorder %s2026_s27, 2  ;;  %s1374_s28 = scalar_lea.sflag [#allocation4], %s1373_s19 }
 0x33d   : > { %p1772_p5 = pnand %p2510_p0, %p2509_p12 }
 0x33f   : > { %p1773_p3 = pneg %p1772_p5 }
 0x341   : > { %2009 = dma.done.wait (%p1773_p3), %s1374_s28, 4096  }
 0x342   : > { %2011 = vsyncadd (%p1773_p3), %s1374_s28, 4294963200  ;;  %p22_p7 = scmp.ge.s32.totalorder %s2159_s14, 4   ;;  %s2511_s24 = smov %s2018_s25 }
 0x343   : > { %s2512_s25 = smov %s2022_s26  ;;  %s2513_s26 = smov %s2169_s17 }
 0x344   : > { %s2514_s27 = smov %s2159_s14  ;;  %24 = sbr.rel (!%p22_p7) target bundleno = 9 (0x9), region = 105 }
 0x349   :  { %1379 = vsyncpa [#allocation3], 1 }
 0x34a   :  { %1381 = vsyncpa [#allocation3 + $0x1], 1 }
 0x34b   :  { %1382 = vsyncpa [#allocation6], 1 }
 0x34c   :  { %1383 = vsyncpa [#allocation9], 1 }
 0x34d   :  { %1384 = vsyncpa [#allocation4], 1 }
 0x34e   :  { %1386 = vsyncpa [#allocation4 + $0x1], 1 }

// kernel: tpu_custom_call.1
= control target key start
LH: loop header
LB: loop body
LE: loop exit
PB: predicated region body
PF: predicated region fallthrough
CT: control target
= control target key end

     0   :  { %s2481_s0 = inlined_call_operand.hbm [shape: f32[512,128], index: 0, kind: input, shape index: {}]   ;;  %s2482_s1 = inlined_call_operand.hbm [shape: bf16[128,128], index: 1, kind: input, shape index: {}]   ;;  %s2483_s2 = inlined_call_operand.vmem [shape: f32[1,128], index: 2, kind: input, shape index: {}]   ;;  %s2484_s3 = inlined_call_operand.hbm [shape: bf16[128,128], index: 3, kind: input, shape index: {}]   ;;  %s2485_s4 = inlined_call_operand.vmem [shape: f32[1,128], index: 4, kind: input, shape index: {}]   ;;  %s2486_s5 = inlined_call_operand.hbm [shape: bf16[128,128], index: 5, kind: input, shape index: {}]   ;;  %s2487_s6 = inlined_call_operand.vmem [shape: f32[1,128], index: 6, kind: input, shape index: {}]   ;;  %s2488_s7 = inlined_call_operand.hbm [shape: f32[512,128], index: 7, kind: output, shape index: {}]  }
   0x1   :  { %2493 = sst [smem:[#allocation15_spill]] %s2482_s1 }
   0x2   :  { %12 = vsyncpa [#allocation3], 0 }
   0x3   :  { %14 = vsyncpa [#allocation3 + $0x1], 0 }
   0x4   :  { %15 = vsyncpa [#allocation6], 0 }
   0x5   :  { %16 = vsyncpa [#allocation9], 0 }
   0x6   :  { %17 = vsyncpa [#allocation4], 0 }
   0x7   :  { %19 = vsyncpa [#allocation4 + $0x1], 0  ;;  %s2079_s24 = smov 0   ;;  %s2081_s25 = smov 0  }
   0x8   :  { %s2083_s26 = smov 0   ;;  %s2085_s27 = smov 0  }
   0x9 LB: > { %s2100_s28 = sadd.s32 4294967295, %s2026_s27   ;;  %s1460_s29 = sadd.s32 4294967294, %s2026_s27   ;;  %s2026_s27 = sphi %s2085_s27, %s2514_s27   ;;  %s2022_s26 = sphi %s2083_s26, %s2513_s26   ;;  %s2018_s25 = sphi %s2081_s25, %s2512_s25   ;;  %s2014_s24 = sphi %s2079_s24, %s2511_s24  }
   0xa   : > { %p45_p0 = scmp.ne.s32.totalorder %s2018_s25, %s2014_s24  ;;  %p2489_p1 = scmp.eq.s32.totalorder %s2100_s28, 0 }
   0xb   : > { %p201_p3 = scmp.eq.s32.totalorder %s1460_s29, 1  ;;  %p1461_p5 = scmp.ge.s32.totalorder %s2026_s27, 1 }
   0xc   : > { %p2109_p4 = por %p2489_p1, %p45_p0  ;;  %p208_p7 = scmp.lt.s32.totalorder %s2026_s27, 3 }
   0xd   : > { %p2114_p6 = por %p201_p3, %p45_p0  ;;  %s2028_s10 = smov [#allocation5]  }
   0xe   : > { %s2494_s30 = scalar_select %p2109_p4, 1, 0 }
   0xf   : > { %s2495_s8 = scalar_select %p2114_p6, 1, 0 }
  0x10   : > { %p2119_p8 = pnand %p1461_p5, %p208_p7  ;;  %s220_s11 = sshll.u32 %s2028_s10, 4  ;;  %s221_s11 = int_to_ptr.vmem [resolvable:$true] %s220_s11 }
  0x11   : > { %s2029_s13 = smov [#allocation7]   ;;  %s2030_s15 = smov [#allocation8]  }
  0x12   : > { %s2496_s9 = scalar_select %p2119_p8, 1, 0 }
  0x13   : > { %p1757_p9 = pneg %p2119_p8  ;;  %s236_s14 = sshll.u32 %s2029_s13, 4  ;;  %s237_s14 = int_to_ptr.vmem [resolvable:$true] %s236_s14 }
  0x14   : > { %s252_s16 = sshll.u32 %s2030_s15, 4  ;;  %s1859_s17 = scalar_lea.vmem %s221_s11, 1024  ;;  %s253_s16 = int_to_ptr.vmem [resolvable:$true] %s252_s16 }
  0x15   : > { %p2128_p11 = pnand %p1757_p9, %p2489_p1  ;;  %p1860_p13 = scmp.ne.s32.totalorder %s221_s11, %s1859_s17 }
  0x16   : > { %p1867_p5 = scmp.lt.s32.totalorder %s221_s11, %s221_s11  ;;  %p1868_p7 = scmp.lt.s32.totalorder %s1859_s17, %s1859_s17 }
  0x17   : > { %p1850_p12 = pneg %p2128_p11 }
  0x18   : > { %p1869_p9 = por %p1868_p7, %p1867_p5 }
  0x19   : > { %p1862_p0 = pnand %p1860_p13, %p1850_p12 }
  0x1b   : > { %p1863_p3 = pneg %p1862_p0 }
  0x1d   : > { %p1870_p10 = pnand %p1869_p9, %p1863_p3 }
  0x1f   : > { %1873 = shalt.err (!%p1870_p10)
}
  0x20   : > { %s2031_s18 = smov 64   ;;  %s2032_s19 = smov 4  }
  0x21   : > { %s2498_s1 = sld [smem:[#allocation15_spill]]  ;;  %s1885_s22 = scalar_lea.vmem %s237_s14, 1024 }
  0x22   : > { %p1886_p1 = scmp.ne.s32.totalorder %s237_s14, %s1885_s22  ;;  %p1893_p2 = scmp.lt.s32.totalorder %s237_s14, %s237_s14 }
  0x23   : > { %p1894_p6 = scmp.lt.s32.totalorder %s1885_s22, %s1885_s22 }
  0x24   : > { %p1888_p13 = pnand %p1886_p1, %p1850_p12 }
  0x25   : > { %p1895_p5 = por %p1894_p6, %p1893_p2 }
  0x26   : > { %p1889_p0 = pneg %p1888_p13 }
  0x27   : > { %1760 = dma.hbm_to_vmem [thread:$0]  (!%p2128_p11), %s2498_s1, 1024, %s221_s11, [#allocation6], %s2031_s18, %s2031_s18, %s2032_s19  }
  0x28   : > { %p1896_p3 = pnand %p1895_p5, %p1889_p0 }
  0x2a   : > { %1899 = shalt.err (!%p1896_p3)
}
  0x2b   : > { %1763 = dma.hbm_to_vmem [thread:$0]  (!%p2128_p11), %s2484_s3, 1024, %s237_s14, [#allocation6], %s2031_s18, %s2031_s18, %s2032_s19  }
  0x2c   : > { %s1911_s10 = scalar_lea.vmem %s253_s16, 1024  ;;  %p1919_p9 = scmp.lt.s32.totalorder %s253_s16, %s253_s16 }
  0x2d   : > { %p1912_p10 = scmp.ne.s32.totalorder %s253_s16, %s1911_s10  ;;  %p1920_p13 = scmp.lt.s32.totalorder %s1911_s10, %s1911_s10 }
  0x2f   : > { %p1914_p7 = pnand %p1912_p10, %p1850_p12  ;;  %p1921_p4 = por %p1920_p13, %p1919_p9 }
  0x31   : > { %p1915_p1 = pneg %p1914_p7 }
  0x33   : > { %p1922_p2 = pnand %p1921_p4, %p1915_p1 }
  0x35   : > { %1925 = shalt.err (!%p1922_p2)
}
  0x36   : > { %1766 = dma.hbm_to_vmem [thread:$0]  (!%p2128_p11), %s2486_s5, 1024, %s253_s16, [#allocation9], %s2031_s18, %s2031_s18, %s2032_s19  }
  0x37   : > { %s2159_s14 = sadd.s32 1, %s2026_s27   ;;  %s32_s12 = sadd.s32 1, %s2022_s26 }
  0x38   : > { %s29_s15 = ssub.s32 %s2026_s27, %s2159_s14  ;;  %p39_p6 = scmp.ne.s32.totalorder %s2022_s26, %s2018_s25 }
  0x39   : > { %p30_p4 = scmp.eq.s32.totalorder %s29_s15, 0  ;;  %p40_p12 = scmp.eq.s32.totalorder %s2026_s27, 0 }
  0x3a   : > { %p1778_p0 = scmp.lt.s32.totalorder %s2026_s27, 2  ;;  %p2499_p3 = scmp.eq.s32.totalorder %s2100_s28, 1 }
  0x3b   : > { %s2169_s17 = scalar_select %p30_p4, %s2022_s26, %s32_s12  }
  0x3c   : > { %p41_p5 = por %p40_p12, %p39_p6  ;;  %p2173_p10 = por %p2499_p3, %p39_p6 }
  0x3d   : > { %s269_s21 = sand.u32 1, %s2022_s26   ;;  %s1507_s22 = sshll.u32 %s2026_s27, 12 }
  0x3e   : > { %s2500_s20 = scalar_select %p2173_p10, 1, 0 }
  0x3f   : > { %s1466_s16 = sshll.u32 %s269_s21, 8  ;;  %s2182_s23 = scalar_lea.hbm %s2481_s0, %s1507_s22 }
  0x40   : > { %s273_s29 = scalar_lea.vmem [#allocation2], %s1466_s16  ;;  %p2184_p11 = pnand %p1778_p0, %p41_p5 }
  0x41   : > { %s280_s10 = sshll.u32 %s273_s29, 4  ;;  %s2190_s13 = scalar_lea.sflag [#allocation3], %s269_s21  ;;  %s2188_s10 = int_to_ptr.vmem [resolvable:$true] %s280_s10 }
  0x42   : > { %s1926_s15 = scalar_lea.hbm %s2182_s23, 4096  ;;  %p1928_p1 = pneg %p2184_p11 }
  0x43   : > { %p1927_p7 = scmp.ne.s32.totalorder %s2182_s23, %s1926_s15  ;;  %s1931_s16 = scalar_lea.hbm %s2481_s0, 8192 }
  0x44   : > { %p1932_p2 = scmp.lt.s32.totalorder %s2182_s23, %s2481_s0  ;;  %p1933_p4 = scmp.lt.s32.totalorder %s1931_s16, %s1926_s15 }
  0x45   : > { %p1929_p9 = pnand %p1928_p1, %p1927_p7 }
  0x46   : > { %p1934_p6 = por %p1933_p4, %p1932_p2 }
  0x47   : > { %p1930_p13 = pneg %p1929_p9 }
  0x49   : > { %p1935_p12 = pnand %p1934_p6, %p1930_p13 }
  0x4b   : > { %1938 = shalt.err (!%p1935_p12)
}
  0x4c   : > { %s1939_s21 = scalar_lea.vmem %s2188_s10, 4096  ;;  %s2033_s29 = smov [#allocation2]  }
  0x4d   : > { %p1940_p0 = scmp.ne.s32.totalorder %s2188_s10, %s1939_s21  ;;  %s1944_s1 = sshll.u32 %s2033_s29, 4  ;;  %s1945_s1 = int_to_ptr.vmem [resolvable:$false] %s1944_s1 }
  0x4e   : > { %s1946_s12 = scalar_lea.vmem %s1945_s1, 8192  ;;  %p1947_p7 = scmp.lt.s32.totalorder %s2188_s10, %s1945_s1 }
  0x4f   : > { %p1942_p5 = pnand %p1940_p0, %p1928_p1  ;;  %p1948_p9 = scmp.lt.s32.totalorder %s1946_s12, %s1939_s21 }
  0x51   : > { %p1943_p3 = pneg %p1942_p5  ;;  %p1949_p10 = por %p1948_p9, %p1947_p7 }
  0x53   : > { %p1950_p8 = pnand %p1949_p10, %p1943_p3 }
  0x55   : > { %1953 = shalt.err (!%p1950_p8)
}
  0x56   : > { %s2034_s15 = smov 128   ;;  %s2035_s22 = smov 8  }
  0x57   : > { %1770 = dma.hbm_to_vmem [thread:$0]  (!%p2184_p11), %s2182_s23, 4096, %s2188_s10, %s2190_s13, %s2034_s15, %s2034_s15, %s2035_s22  }
  0x58   : > { %p2502_p1 = scmp.ne.s32.totalorder %s2496_s9, 0 }
  0x59   : > { %s2214_s16 = sand.u32 (!%p2502_p1), 1, %s2018_s25   ;;  %p2503_p8 = scmp.ne.s32.totalorder (!%p2502_p1), %s2494_s30, 0 }
  0x5a   : > { %292 = sbr.rel (%p2502_p1) target bundleno = 826 (0x33a), region = 48  ;;  %s1470_s1 = sshll.u32 (!%p2502_p1), %s2214_s16, 8 }
  0x5b   : > { %s295_s18 = scalar_lea.sflag (!%p2502_p1), [#allocation3], %s2214_s16  ;;  %s2220_s19 = scalar_lea.vmem (!%p2502_p1), [#allocation2], %s1470_s1 }
  0x5f   : > { %1997 = dma.done.wait (%p2503_p8), %s295_s18, 4096  }
  0x60   : > { %1999 = vsyncadd (%p2503_p8), %s295_s18, 4294963200  ;;  %p2504_p10 = scmp.eq.s32.totalorder %s2100_s28, 0 }
  0x62   : > { %2001 = dma.done.wait (%p2504_p10), [#allocation6], 2048   ;;  %p2505_p11 = pmov %p2504_p10 }
  0x63   : > { %p2506_p13 = pmov %p2504_p10 }
  0x64   : > { %2003 = vsyncadd (%p2505_p11), [#allocation6], 4294965248 }
  0x65   : > { %2005 = dma.done.wait (%p2506_p13), [#allocation9], 1024   ;;  %p2507_p2 = pmov %p2504_p10 }
  0x66   : > { %v1824_v0 = vld [vmem:[#allocation5 + $0x38] sm:$0xff]   ;;  %v1825_v1 = vld [vmem:[#allocation5 + $0x30] sm:$0xff]   ;;  %v1826_v2 = vld [vmem:[#allocation5 + $0x28] sm:$0xff]   ;;  %s2368_s21 = scalar_lea.vmem [#allocation10], %s1470_s1  ;;  %s1508_s29 = sshll.u32 %s2100_s28, 12 }
  0x67   : > { %2007 = vsyncadd (%p2507_p2), [#allocation9], 4294966272  ;;  %1581 = vmatprep.subr.bf16.mxu0 %v1824_v0  ;;  %1725 = vmatprep.subr.bf16.mxu1 %v1824_v0  ;;  %v1827_v3 = vld [vmem:[#allocation5 + $0x20] sm:$0xff]   ;;  %v345_v5 = vld [vmem:[%s2220_s19 + $0x8] sm:$0xff]  ;;  %s1358_s12 = sshll.u32 %s2368_s21, 4  ;;  %s2434_s1 = scalar_lea.hbm %s2488_s7, %s1508_s29  ;;  %s2436_s12 = int_to_ptr.vmem [resolvable:$true] %s1358_s12 }
  0x68   : > { %1582 = vmatpush3.bf16.msra.mxu0 %v1824_v0  ;;  %1733 = vmatpush3.bf16.msra.mxu1 %v1824_v0  ;;  %v344_v4 = vld [vmem:[%s2220_s19] sm:$0xff]  ;;  %v1828_v7 = vld [vmem:[#allocation5 + $0x18] sm:$0xff]   ;;  %v361_v9 = vld [vmem:[%s2220_s19 + $0x88] sm:$0xff]  ;;  %s1345_s18 = scalar_lea.sflag [#allocation4], %s2214_s16  ;;  %p2508_p6 = scmp.ne.s32.totalorder %s2500_s20, 0 }
  0x69   : > { %1583 = vmatprep.subr.bf16.mxu0 %v1825_v1  ;;  %1726 = vmatprep.subr.bf16.mxu1 %v1825_v1  ;;  %v376_v6 = vpack.c.bf16 %v345_v5, %v344_v4  ;;  %v360_v8 = vld [vmem:[%s2220_s19 + $0x80] sm:$0xff]  ;;  %v1829_v11 = vld [vmem:[#allocation5 + $0x10] sm:$0xff]   ;;  %v1830_v12 = vld [vmem:[#allocation5 + $0x8] sm:$0xff]   ;;  %s2036_s28 = smov [#allocation10]  }
  0x6a   : > { %v384_v10 = vpack.c.bf16 %v361_v9, %v360_v8  ;;  %v1831_v13 = vld [vmem:[#allocation5] sm:$0xff]   ;;  %v346_v14 = vld [vmem:[%s2220_s19 + $0x10] sm:$0xff]  ;;  %v347_v15 = vld [vmem:[%s2220_s19 + $0x18] sm:$0xff]  ;;  %s1958_s30 = sshll.u32 %s2036_s28, 4  ;;  %s1959_s30 = int_to_ptr.vmem [resolvable:$false] %s1958_s30 }
  0x6b   : > { %1597 = vmatprep.mubr.bf16.mxu0 %v376_v6  ;;  %v348_v16 = vld [vmem:[%s2220_s19 + $0x20] sm:$0xff]  ;;  %v349_v17 = vld [vmem:[%s2220_s19 + $0x28] sm:$0xff]  ;;  %v362_v18 = vld [vmem:[%s2220_s19 + $0x90] sm:$0xff]  ;;  %v377_v23 = vpack.c.bf16 %v347_v15, %v346_v14  ;;  %s1960_s9 = scalar_lea.vmem %s1959_s30, 8192  ;;  %p1961_p5 = scmp.lt.s32.totalorder %s2436_s12, %s1959_s30 }
  0x6c   : > { %1584 = vmatpush3.bf16.msra.mxu0 %v1825_v1  ;;  %1734 = vmatpush3.bf16.msra.mxu1 %v1825_v1  ;;  %v363_v19 = vld [vmem:[%s2220_s19 + $0x98] sm:$0xff]  ;;  %v364_v20 = vld [vmem:[%s2220_s19 + $0xa0] sm:$0xff]  ;;  %v365_v21 = vld [vmem:[%s2220_s19 + $0xa8] sm:$0xff]  ;;  %v378_v24 = vpack.c.bf16 %v349_v17, %v348_v16 }
  0x6d   : > { %1585 = vmatprep.subr.bf16.mxu0 %v1826_v2  ;;  %1727 = vmatprep.subr.bf16.mxu1 %v1826_v2  ;;  %v1832_v22 = vld [vmem:[#allocation7 + $0x38] sm:$0xff]   ;;  %v385_v25 = vpack.c.bf16 %v363_v19, %v362_v18  ;;  %v386_v26 = vpack.c.bf16 %v365_v21, %v364_v20  ;;  %v1833_v27 = vld [vmem:[#allocation7 + $0x30] sm:$0xff]   ;;  %v352_v30 = vld [vmem:[%s2220_s19 + $0x40] sm:$0xff] }
  0x6e   : > { %1613 = vmatprep.mubr.bf16.mxu1 %v384_v10  ;;  %v350_v28 = vld [vmem:[%s2220_s19 + $0x30] sm:$0xff]  ;;  %v351_v29 = vld [vmem:[%s2220_s19 + $0x38] sm:$0xff]  ;;  %v353_v31 = vld [vmem:[%s2220_s19 + $0x48] sm:$0xff] }
  0x6f   : > { %v366_v32 = vld [vmem:[%s2220_s19 + $0xb0] sm:$0xff]  ;;  %v367_v33 = vld [vmem:[%s2220_s19 + $0xb8] sm:$0xff]  ;;  %v368_v34 = vld [vmem:[%s2220_s19 + $0xc0] sm:$0xff]  ;;  %v379_v37 = vpack.c.bf16 %v351_v29, %v350_v28  ;;  %v380_v38 = vpack.c.bf16 %v353_v31, %v352_v30 }
  0x70   : > { %1586 = vmatpush3.bf16.msra.mxu0 %v1826_v2  ;;  %1735 = vmatpush3.bf16.msra.mxu1 %v1826_v2  ;;  %v369_v35 = vld [vmem:[%s2220_s19 + $0xc8] sm:$0xff]  ;;  %v387_v39 = vpack.c.bf16 %v367_v33, %v366_v32  ;;  %v1835_v41 = vld [vmem:[#allocation7 + $0x20] sm:$0xff]   ;;  %v354_v42 = vld [vmem:[%s2220_s19 + $0x50] sm:$0xff] }
  0x71   : > { %1587 = vmatprep.subr.bf16.mxu0 %v1827_v3  ;;  %1728 = vmatprep.subr.bf16.mxu1 %v1827_v3  ;;  %v1834_v36 = vld [vmem:[#allocation7 + $0x28] sm:$0xff]   ;;  %v388_v40 = vpack.c.bf16 %v369_v35, %v368_v34  ;;  %v355_v43 = vld [vmem:[%s2220_s19 + $0x58] sm:$0xff]  ;;  %v356_v44 = vld [vmem:[%s2220_s19 + $0x60] sm:$0xff] }
  0x72   : > { %v357_v45 = vld [vmem:[%s2220_s19 + $0x68] sm:$0xff]  ;;  %v370_v46 = vld [vmem:[%s2220_s19 + $0xd0] sm:$0xff]  ;;  %v371_v47 = vld [vmem:[%s2220_s19 + $0xd8] sm:$0xff]  ;;  %v381_v51 = vpack.c.bf16 %v355_v43, %v354_v42 }
  0x73   : > { %v372_v48 = vld [vmem:[%s2220_s19 + $0xe0] sm:$0xff]  ;;  %v373_v49 = vld [vmem:[%s2220_s19 + $0xe8] sm:$0xff]  ;;  %v1836_v50 = vld [vmem:[#allocation7 + $0x18] sm:$0xff]   ;;  %v382_v52 = vpack.c.bf16 %v357_v45, %v356_v44  ;;  %v389_v53 = vpack.c.bf16 %v371_v47, %v370_v46 }
  0x74   : > { %1588 = vmatpush3.bf16.msra.mxu0 %v1827_v3  ;;  %1736 = vmatpush3.bf16.msra.mxu1 %v1827_v3  ;;  %v390_v54 = vpack.c.bf16 %v373_v49, %v372_v48  ;;  %v358_v55 = vld [vmem:[%s2220_s19 + $0x70] sm:$0xff]  ;;  %v359_v56 = vld [vmem:[%s2220_s19 + $0x78] sm:$0xff]  ;;  %v1838_v62 = vld [vmem:[#allocation7 + $0x8] sm:$0xff]  }
  0x75   : > { %1589 = vmatprep.subr.bf16.mxu0 %v1828_v7  ;;  %1729 = vmatprep.subr.bf16.mxu1 %v1828_v7  ;;  %v374_v57 = vld [vmem:[%s2220_s19 + $0xf0] sm:$0xff]  ;;  %v375_v58 = vld [vmem:[%s2220_s19 + $0xf8] sm:$0xff]  ;;  %v383_v59 = vpack.c.bf16 %v359_v56, %v358_v55  ;;  %v1839_v63 = vld [vmem:[#allocation7] sm:$0xff]   ;;  %s1954_s19 = scalar_lea.vmem %s2436_s12, 4096 }
  0x76   : > { %v391_v60 = vpack.c.bf16 %v375_v58, %v374_v57  ;;  %v1837_v61 = vld [vmem:[#allocation7 + $0x10] sm:$0xff]   ;;  %v1840_v0 = vld [vmem:[#allocation8 + $0x38] sm:$0xff]   ;;  %v1842_v2 = vld [vmem:[#allocation8 + $0x28] sm:$0xff]   ;;  %p1955_p4 = scmp.ne.s32.totalorder %s2436_s12, %s1954_s19  ;;  %p1962_p3 = scmp.lt.s32.totalorder %s1960_s9, %s1954_s19 }
  0x77   : > { %v1841_v1 = vld [vmem:[#allocation8 + $0x30] sm:$0xff]   ;;  %v1843_v3 = vld [vmem:[#allocation8 + $0x20] sm:$0xff]   ;;  %v1844_v4 = vld [vmem:[#allocation8 + $0x18] sm:$0xff]  }
  0x78   : > { %1590 = vmatpush3.bf16.msra.mxu0 %v1828_v7  ;;  %1737 = vmatpush3.bf16.msra.mxu1 %v1828_v7  ;;  %v2269_v6 = vld [vmem:[%s2483_s2] ss:$0 sm:$0xff]  ;;  %p1956_p12 = pnand %p1955_p4, %p2508_p6  ;;  %p1963_p7 = por %p1962_p3, %p1961_p5 }
  0x79   : > { %1591 = vmatprep.subr.bf16.mxu0 %v1829_v11  ;;  %1730 = vmatprep.subr.bf16.mxu1 %v1829_v11 }
  0x7a   : > { %p1957_p0 = pneg %p1956_p12 }
  0x7c   : > { %1592 = vmatpush3.bf16.msra.mxu0 %v1829_v11  ;;  %1738 = vmatpush3.bf16.msra.mxu1 %v1829_v11  ;;  %p1964_p9 = pnand %p1963_p7, %p1957_p0 }
  0x7d   : > { %1593 = vmatprep.subr.bf16.mxu0 %v1830_v12  ;;  %1731 = vmatprep.subr.bf16.mxu1 %v1830_v12 }
  0x80   : > { %1594 = vmatpush3.bf16.msra.mxu0 %v1830_v12  ;;  %1739 = vmatpush3.bf16.msra.mxu1 %v1830_v12 }
  0x81   : > { %1595 = vmatprep.subr.bf16.mxu0 %v1831_v13  ;;  %1732 = vmatprep.subr.bf16.mxu1 %v1831_v13 }
  0x84   : > { %1596 = vmatpush3.bf16.msra.mxu0 %v1831_v13  ;;  %1740 = vmatpush3.bf16.msra.mxu1 %v1831_v13 }
  0x85   : > { %1629 = vmatprep.subr.bf16.mxu1 %v1832_v22  ;;  %1677 = vmatprep.subr.bf16.mxu0 %v1840_v0 }
  0x87   : > { %1598 = vmatmul.mubr.bf16.vlgmr.msra.gmra.mxu0 %v377_v23  ;;  %1614 = vmatmul.mubr.bf16.vlgmr.msra.gmra.mxu1 %v385_v25 }
  0x88   : > { %1601 = vmatprep.mubr.bf16.mxu0 %v378_v24  ;;  %1617 = vmatprep.mubr.bf16.mxu1 %v386_v26 }
  0x89   : > { %1630 = vmatpush3.bf16.msra.mxu1 %v1832_v22  ;;  %1678 = vmatpush3.bf16.msra.mxu0 %v1840_v0 }
  0x8a   : > { %1631 = vmatprep.subr.bf16.mxu1 %v1833_v27  ;;  %1679 = vmatprep.subr.bf16.mxu0 %v1841_v1 }
  0x8d   : > { %1632 = vmatpush3.bf16.msra.mxu1 %v1833_v27  ;;  %1680 = vmatpush3.bf16.msra.mxu0 %v1841_v1 }
  0x8e   : > { %1633 = vmatprep.subr.bf16.mxu1 %v1834_v36  ;;  %1681 = vmatprep.subr.bf16.mxu0 %v1842_v2 }
  0x8f   : > { %1602 = vmatmul.mubr.bf16.gmra.mxu0 %v379_v37  ;;  %1618 = vmatmul.mubr.bf16.gmra.mxu1 %v387_v39 }
  0x90   : > { %1605 = vmatprep.mubr.bf16.mxu0 %v380_v38  ;;  %1621 = vmatprep.mubr.bf16.mxu1 %v388_v40 }
  0x91   : > { %1634 = vmatpush3.bf16.msra.mxu1 %v1834_v36  ;;  %1682 = vmatpush3.bf16.msra.mxu0 %v1842_v2 }
  0x92   : > { %1635 = vmatprep.subr.bf16.mxu1 %v1835_v41  ;;  %1683 = vmatprep.subr.bf16.mxu0 %v1843_v3 }
  0x95   : > { %1636 = vmatpush3.bf16.msra.mxu1 %v1835_v41  ;;  %1684 = vmatpush3.bf16.msra.mxu0 %v1843_v3 }
  0x96   : > { %1637 = vmatprep.subr.bf16.mxu1 %v1836_v50  ;;  %1685 = vmatprep.subr.bf16.mxu0 %v1844_v4 }
  0x97   : > { %1606 = vmatmul.mubr.bf16.gmra.mxu0 %v381_v51  ;;  %1622 = vmatmul.mubr.bf16.gmra.mxu1 %v389_v53 }
  0x98   : > { %1609 = vmatprep.mubr.bf16.mxu0 %v382_v52  ;;  %1625 = vmatprep.mubr.bf16.mxu1 %v390_v54 }
  0x99   : > { %1638 = vmatpush3.bf16.msra.mxu1 %v1836_v50  ;;  %1686 = vmatpush3.bf16.msra.mxu0 %v1844_v4 }
  0x9a   : > { %1639 = vmatprep.subr.bf16.mxu1 %v1837_v61 }
  0x9d   : > { %1640 = vmatpush3.bf16.msra.mxu1 %v1837_v61 }
  0x9e   : > { %1641 = vmatprep.subr.bf16.mxu1 %v1838_v62 }
  0x9f   : > { %1610 = vmatmul.mubr.bf16.gmra.mxu0 %v383_v59  ;;  %1626 = vmatmul.mubr.bf16.gmra.mxu1 %v391_v60 }
  0xa1   : > { %1642 = vmatpush3.bf16.msra.mxu1 %v1838_v62 }
  0xa2   : > { %1643 = vmatprep.subr.bf16.mxu1 %v1839_v63 }
  0xa5   : > { %1644 = vmatpush3.bf16.msra.mxu1 %v1839_v63 }
 0x147   : > { %v1599_v5 = vpop.f32.mrf.mxu0  ;;  %v2271_v7 = vpop.f32.mrf.mxu1 }
 0x148   : > { %v506_v11 = vadd.f32 %v1599_v5, %v2269_v6 }
 0x149   : > { %v497_v8 = vpop.f32.mrf.mxu0  ;;  %v561_v10 = vpop.f32.mrf.mxu1 }
 0x14a   : > { %v498_v9 = vadd.f32 %v2269_v6, %v497_v8  ;;  %v626_v20 = vmul.f32 0.01, %v506_v11  ;;  %v562_v3 = vadd.f32 %v2269_v6, %v561_v10 }
 0x14b   : > { %v1600_v12 = vpop.f32.mrf.mxu0  ;;  %v2276_v14 = vpop.f32.mrf.mxu1 }
 0x14c   : > { %v509_v13 = vadd.f32 %v1600_v12, %v2269_v6  ;;  %v624_v16 = vmul.f32 0.01, %v498_v9  ;;  %v658_v30 = vmax.f32 %v506_v11, %v626_v20 }
 0x14d   : > { %v500_v15 = vpop.f32.mrf.mxu0  ;;  %v564_v19 = vpop.f32.mrf.mxu1 }
 0x14e   : > { %v627_v17 = vmul.f32 0.01, %v509_v13  ;;  %v501_v18 = vadd.f32 %v2269_v6, %v500_v15  ;;  %v656_v26 = vmax.f32 %v498_v9, %v624_v16  ;;  %v565_v4 = vadd.f32 %v2269_v6, %v564_v19 }
 0x14f   : > { %v1603_v21 = vpop.f32.mrf.mxu0  ;;  %v2279_v23 = vpop.f32.mrf.mxu1 }
 0x150   : > { %v625_v22 = vmul.f32 0.01, %v501_v18  ;;  %v659_v24 = vmax.f32 %v509_v13, %v627_v17  ;;  %v522_v31 = vadd.f32 %v1603_v21, %v2269_v6  ;;  %v641_v21 = vmul.f32 0.01, %v565_v4 }
 0x151   : > { %v513_v25 = vpop.f32.mrf.mxu0  ;;  %v2282_v29 = vpop.f32.mrf.mxu1 }
 0x152   : > { %v657_v27 = vmax.f32 %v501_v18, %v625_v22  ;;  %v514_v28 = vadd.f32 %v2269_v6, %v513_v25  ;;  %v689_v36 = vpack.c.bf16 %v659_v24, %v658_v30  ;;  %v630_v41 = vmul.f32 0.01, %v522_v31 }
 0x153   : > { %v1604_v32 = vpop.f32.mrf.mxu0  ;;  %v2286_v35 = vpop.f32.mrf.mxu1  ;;  %v640_v18 = vmul.f32 0.01, %v562_v3 }
 0x154   : > { %v525_v33 = vadd.f32 %v1604_v32, %v2269_v6  ;;  %v688_v34 = vpack.c.bf16 %v657_v27, %v656_v26  ;;  %v628_v38 = vmul.f32 0.01, %v514_v28  ;;  %v662_v50 = vmax.f32 %v522_v31, %v630_v41 }
 0x155   : > { %v516_v37 = vpop.f32.mrf.mxu0  ;;  %v580_v43 = vpop.f32.mrf.mxu1  ;;  %v570_v27 = vadd.f32 %v2271_v7, %v2269_v6  ;;  %v672_v30 = vmax.f32 %v562_v3, %v640_v18  ;;  %v573_v32 = vadd.f32 %v2276_v14, %v2269_v6 }
 0x156   : > { %v631_v39 = vmul.f32 0.01, %v525_v33  ;;  %v517_v40 = vadd.f32 %v2269_v6, %v516_v37  ;;  %1645 = vmatprep.mubr.bf16.mxu1 %v688_v34  ;;  %v660_v47 = vmax.f32 %v514_v28, %v628_v38  ;;  %v578_v37 = vadd.f32 %v2269_v6, %v2282_v29 }
 0x157   : > { %v1607_v42 = vpop.f32.mrf.mxu0  ;;  %1646 = vmatmul.mubr.bf16.vlgmr.msra.gmra.mxu1 %v689_v36  ;;  %v2291_v53 = vpop.f32.mrf.mxu1  ;;  %v581_v38 = vadd.f32 %v2269_v6, %v580_v43  ;;  %v586_v29 = vadd.f32 %v2279_v23, %v2269_v6  ;;  %v589_v43 = vadd.f32 %v2286_v35, %v2269_v6 }
 0x158   : > { %v629_v44 = vmul.f32 0.01, %v517_v40  ;;  %v663_v45 = vmax.f32 %v525_v33, %v631_v39  ;;  %v538_v51 = vadd.f32 %v1607_v42, %v2269_v6  ;;  %v673_v33 = vmax.f32 %v565_v4, %v641_v21 }
 0x159   : > { %v529_v46 = vpop.f32.mrf.mxu0  ;;  %v593_v63 = vpop.f32.mrf.mxu1  ;;  %v642_v42 = vmul.f32 0.01, %v570_v27  ;;  %v602_v35 = vadd.f32 %v2291_v53, %v2269_v6 }
 0x15a   : > { %v661_v48 = vmax.f32 %v517_v40, %v629_v44  ;;  %v530_v49 = vadd.f32 %v2269_v6, %v529_v46  ;;  %v691_v57 = vpack.c.bf16 %v663_v45, %v662_v50  ;;  %v634_v61 = vmul.f32 0.01, %v538_v51 }
 0x15b   : > { %v1608_v52 = vpop.f32.mrf.mxu0  ;;  %v1624_v15 = vpop.f32.mrf.mxu1  ;;  %v643_v44 = vmul.f32 0.01, %v573_v32  ;;  %v644_v45 = vmul.f32 0.01, %v578_v37  ;;  %v645_v46 = vmul.f32 0.01, %v581_v38 }
 0x15c   : > { %v541_v54 = vadd.f32 %v1608_v52, %v2269_v6  ;;  %v690_v55 = vpack.c.bf16 %v661_v48, %v660_v47  ;;  %v632_v58 = vmul.f32 0.01, %v530_v49  ;;  %v666_v11 = vmax.f32 %v538_v51, %v634_v61 }
 0x15d   : > { %v532_v56 = vpop.f32.mrf.mxu0  ;;  %v596_v26 = vpop.f32.mrf.mxu1  ;;  %v696_v47 = vpack.c.bf16 %v673_v33, %v672_v30  ;;  %v674_v48 = vmax.f32 %v570_v27, %v642_v42  ;;  %v676_v50 = vmax.f32 %v578_v37, %v644_v45  ;;  %v677_v51 = vmax.f32 %v581_v38, %v645_v46  ;;  %v1845_v27 = vld [vmem:[#allocation8 + $0x10] sm:$0xff]   ;;  %v1847_v30 = vld [vmem:[#allocation8] sm:$0xff]  }
 0x15e   : > { %v635_v59 = vmul.f32 0.01, %v541_v54  ;;  %v533_v60 = vadd.f32 %v2269_v6, %v532_v56  ;;  %1649 = vmatprep.mubr.bf16.mxu1 %v690_v55  ;;  %v664_v5 = vmax.f32 %v530_v49, %v632_v58  ;;  %v675_v49 = vmax.f32 %v573_v32, %v643_v44  ;;  %1687 = vmatprep.subr.bf16.mxu0 %v1845_v27 }
 0x15f   : > { %v1611_v62 = vpop.f32.mrf.mxu0  ;;  %1650 = vmatmul.mubr.bf16.gmra.mxu1 %v691_v57  ;;  %v1627_v40 = vpop.f32.mrf.mxu1  ;;  %v594_v52 = vadd.f32 %v2269_v6, %v593_v63  ;;  %v646_v56 = vmul.f32 0.01, %v586_v29  ;;  %v647_v57 = vmul.f32 0.01, %v589_v43  ;;  %v698_v61 = vpack.c.bf16 %v677_v51, %v676_v50  ;;  %1688 = vmatpush3.bf16.msra.mxu0 %v1845_v27 }
 0x160   : > { %v633_v0 = vmul.f32 0.01, %v533_v60  ;;  %v667_v1 = vmax.f32 %v541_v54, %v635_v59  ;;  %v554_v12 = vadd.f32 %v1611_v62, %v2269_v6  ;;  %v597_v54 = vadd.f32 %v2269_v6, %v596_v26 }
 0x161   : > { %v545_v2 = vpop.f32.mrf.mxu0  ;;  %v609_v14 = vpop.f32.mrf.mxu1  ;;  %v697_v58 = vpack.c.bf16 %v675_v49, %v674_v48  ;;  %v648_v59 = vmul.f32 0.01, %v594_v52  ;;  %v678_v23 = vmax.f32 %v586_v29, %v646_v56  ;;  %v618_v53 = vadd.f32 %v1627_v40, %v2269_v6 }
 0x162   : > { %v665_v8 = vmax.f32 %v533_v60, %v633_v0  ;;  %v546_v9 = vadd.f32 %v2269_v6, %v545_v2  ;;  %v693_v22 = vpack.c.bf16 %v667_v1, %v666_v11  ;;  %v638_v25 = vmul.f32 0.01, %v554_v12 }
 0x163   : > { %v1612_v13 = vpop.f32.mrf.mxu0  ;;  %v1628_v55 = vpop.f32.mrf.mxu1  ;;  %v649_v60 = vmul.f32 0.01, %v597_v54  ;;  %v679_v0 = vmax.f32 %v589_v43, %v647_v57  ;;  %v605_v1 = vadd.f32 %v1624_v15, %v2269_v6  ;;  %v680_v63 = vmax.f32 %v594_v52, %v648_v59 }
 0x164   : > { %v557_v16 = vadd.f32 %v1612_v13, %v2269_v6  ;;  %v692_v17 = vpack.c.bf16 %v665_v8, %v664_v5  ;;  %v636_v24 = vmul.f32 0.01, %v546_v9  ;;  %v670_v39 = vmax.f32 %v554_v12, %v638_v25 }
 0x165   : > { %v548_v20 = vpop.f32.mrf.mxu0  ;;  %v612_v62 = vpop.f32.mrf.mxu1  ;;  %v681_v2 = vmax.f32 %v597_v54, %v649_v60  ;;  %v610_v3 = vadd.f32 %v2269_v6, %v609_v14  ;;  %v650_v5 = vmul.f32 0.01, %v602_v35  ;;  %v651_v8 = vmul.f32 0.01, %v605_v1 }
 0x166   : > { %v639_v10 = vmul.f32 0.01, %v557_v16  ;;  %v549_v19 = vadd.f32 %v2269_v6, %v548_v20  ;;  %1653 = vmatprep.mubr.bf16.mxu1 %v692_v17  ;;  %v668_v34 = vmax.f32 %v546_v9, %v636_v24  ;;  %v613_v4 = vadd.f32 %v2269_v6, %v612_v62 }
 0x167   : > { %1654 = vmatmul.mubr.bf16.gmra.mxu1 %v693_v22  ;;  %v699_v9 = vpack.c.bf16 %v679_v0, %v678_v23  ;;  %v652_v11 = vmul.f32 0.01, %v610_v3  ;;  %v700_v13 = vpack.c.bf16 %v681_v2, %v680_v63  ;;  %v683_v17 = vmax.f32 %v605_v1, %v651_v8 }
 0x168   : > { %v637_v28 = vmul.f32 0.01, %v549_v19  ;;  %v671_v31 = vmax.f32 %v557_v16, %v639_v10  ;;  %v653_v12 = vmul.f32 0.01, %v613_v4  ;;  %v682_v16 = vmax.f32 %v602_v35, %v650_v5 }
 0x169   : > { %v621_v15 = vadd.f32 %v1628_v55, %v2269_v6  ;;  %v684_v18 = vmax.f32 %v610_v3, %v652_v11  ;;  %v654_v21 = vmul.f32 0.01, %v618_v53 }
 0x16a   : > { %v669_v36 = vmax.f32 %v549_v19, %v637_v28  ;;  %v695_v7 = vpack.c.bf16 %v671_v31, %v670_v39  ;;  %v685_v20 = vmax.f32 %v613_v4, %v653_v12  ;;  %v701_v24 = vpack.c.bf16 %v683_v17, %v682_v16  ;;  %v1846_v28 = vld [vmem:[#allocation8 + $0x8] sm:$0xff]   ;;  %v2324_v31 = vld [vmem:[%s2485_s4] ss:$0 sm:$0xff] }
 0x16b   : > { %v655_v22 = vmul.f32 0.01, %v621_v15  ;;  %v686_v19 = vmax.f32 %v618_v53, %v654_v21  ;;  %1689 = vmatprep.subr.bf16.mxu0 %v1846_v28 }
 0x16c   : > { %v694_v41 = vpack.c.bf16 %v669_v36, %v668_v34  ;;  %v702_v10 = vpack.c.bf16 %v685_v20, %v684_v18  ;;  %1690 = vmatpush3.bf16.msra.mxu0 %v1846_v28 }
 0x16d   : > { %v687_v25 = vmax.f32 %v621_v15, %v655_v22  ;;  %1691 = vmatprep.subr.bf16.mxu0 %v1847_v30 }
 0x16e   : > { %1657 = vmatprep.mubr.bf16.mxu1 %v694_v41 }
 0x16f   : > { %1658 = vmatmul.mubr.bf16.gmra.mxu1 %v695_v7  ;;  %v703_v26 = vpack.c.bf16 %v687_v25, %v686_v19 }
 0x170   : > { %1661 = vmatprep.mubr.bf16.mxu1 %v696_v47  ;;  %1692 = vmatpush3.bf16.msra.mxu0 %v1847_v30 }
 0x177   : > { %1662 = vmatmul.mubr.bf16.gmra.mxu1 %v697_v58 }
 0x178   : > { %1665 = vmatprep.mubr.bf16.mxu1 %v698_v61 }
 0x17f   : > { %1666 = vmatmul.mubr.bf16.gmra.mxu1 %v699_v9 }
 0x180   : > { %1669 = vmatprep.mubr.bf16.mxu1 %v700_v13 }
 0x187   : > { %1670 = vmatmul.mubr.bf16.gmra.mxu1 %v701_v24 }
 0x188   : > { %1673 = vmatprep.mubr.bf16.mxu1 %v702_v10 }
 0x18f   : > { %1674 = vmatmul.mubr.bf16.gmra.mxu1 %v703_v26 }
 0x217   : > { %v1647_v6 = vpop.f32.mrf.mxu1 }
 0x218   : > { %v818_v34 = vadd.f32 %v1647_v6, %v2324_v31 }
 0x219   : > { %v809_v32 = vpop.f32.mrf.mxu1 }
 0x21a   : > { %v810_v33 = vadd.f32 %v2324_v31, %v809_v32  ;;  %v938_v42 = vmul.f32 0.01, %v818_v34 }
 0x21b   : > { %v1648_v36 = vpop.f32.mrf.mxu1 }
 0x21c   : > { %v821_v37 = vadd.f32 %v1648_v36, %v2324_v31  ;;  %v936_v39 = vmul.f32 0.01, %v810_v33  ;;  %v970_v49 = vmax.f32 %v818_v34, %v938_v42 }
 0x21d   : > { %v812_v38 = vpop.f32.mrf.mxu1 }
 0x21e   : > { %v939_v40 = vmul.f32 0.01, %v821_v37  ;;  %v813_v41 = vadd.f32 %v2324_v31, %v812_v38  ;;  %v968_v47 = vmax.f32 %v810_v33, %v936_v39 }
 0x21f   : > { %v1651_v44 = vpop.f32.mrf.mxu1 }
 0x220   : > { %v937_v7 = vmul.f32 0.01, %v813_v41  ;;  %v971_v45 = vmax.f32 %v821_v37, %v939_v40  ;;  %v834_v29 = vadd.f32 %v1651_v44, %v2324_v31 }
 0x221   : > { %v825_v46 = vpop.f32.mrf.mxu1 }
 0x222   : > { %v969_v14 = vmax.f32 %v813_v41, %v937_v7  ;;  %v826_v48 = vadd.f32 %v2324_v31, %v825_v46  ;;  %v1001_v52 = vpack.c.bf16 %v971_v45, %v970_v49  ;;  %v942_v58 = vmul.f32 0.01, %v834_v29 }
 0x223   : > { %v1652_v43 = vpop.f32.mrf.mxu1 }
 0x224   : > { %v837_v50 = vadd.f32 %v1652_v43, %v2324_v31  ;;  %v1000_v51 = vpack.c.bf16 %v969_v14, %v968_v47  ;;  %v940_v55 = vmul.f32 0.01, %v826_v48  ;;  %v974_v1 = vmax.f32 %v834_v29, %v942_v58 }
 0x225   : > { %v828_v54 = vpop.f32.mrf.mxu1 }
 0x226   : > { %v943_v56 = vmul.f32 0.01, %v837_v50  ;;  %v829_v57 = vadd.f32 %v2324_v31, %v828_v54  ;;  %1693 = vmatprep.mubr.bf16.mxu0 %v1000_v51  ;;  %v972_v23 = vmax.f32 %v826_v48, %v940_v55 }
 0x227   : > { %v1655_v59 = vpop.f32.mrf.mxu1  ;;  %1694 = vmatmul.mubr.bf16.vlgmr.msra.gmra.mxu0 %v1001_v52 }
 0x228   : > { %v941_v60 = vmul.f32 0.01, %v829_v57  ;;  %v975_v61 = vmax.f32 %v837_v50, %v943_v56  ;;  %v850_v63 = vadd.f32 %v1655_v59, %v2324_v31 }
 0x229   : > { %v841_v62 = vpop.f32.mrf.mxu1 }
 0x22a   : > { %v973_v0 = vmax.f32 %v829_v57, %v941_v60  ;;  %v842_v35 = vadd.f32 %v2324_v31, %v841_v62  ;;  %v1003_v8 = vpack.c.bf16 %v975_v61, %v974_v1  ;;  %v946_v13 = vmul.f32 0.01, %v850_v63 }
 0x22b   : > { %v1656_v2 = vpop.f32.mrf.mxu1 }
 0x22c   : > { %v853_v3 = vadd.f32 %v1656_v2, %v2324_v31  ;;  %v1002_v4 = vpack.c.bf16 %v973_v0, %v972_v23  ;;  %v944_v9 = vmul.f32 0.01, %v842_v35  ;;  %v978_v22 = vmax.f32 %v850_v63, %v946_v13 }
 0x22d   : > { %v844_v5 = vpop.f32.mrf.mxu1 }
 0x22e   : > { %v947_v11 = vmul.f32 0.01, %v853_v3  ;;  %v845_v12 = vadd.f32 %v2324_v31, %v844_v5  ;;  %1697 = vmatprep.mubr.bf16.mxu0 %v1002_v4  ;;  %v976_v18 = vmax.f32 %v842_v35, %v944_v9 }
 0x22f   : > { %v1659_v16 = vpop.f32.mrf.mxu1  ;;  %1698 = vmatmul.mubr.bf16.gmra.mxu0 %v1003_v8 }
 0x230   : > { %v945_v17 = vmul.f32 0.01, %v845_v12  ;;  %v979_v53 = vmax.f32 %v853_v3, %v947_v11  ;;  %v866_v24 = vadd.f32 %v1659_v16, %v2324_v31 }
 0x231   : > { %v857_v15 = vpop.f32.mrf.mxu1 }
 0x232   : > { %v977_v20 = vmax.f32 %v845_v12, %v945_v17  ;;  %v858_v21 = vadd.f32 %v2324_v31, %v857_v15  ;;  %v1005_v27 = vpack.c.bf16 %v979_v53, %v978_v22  ;;  %v950_v32 = vmul.f32 0.01, %v866_v24 }
 0x233   : > { %v1660_v10 = vpop.f32.mrf.mxu1 }
 0x234   : > { %v869_v19 = vadd.f32 %v1660_v10, %v2324_v31  ;;  %v1004_v25 = vpack.c.bf16 %v977_v20, %v976_v18  ;;  %v948_v28 = vmul.f32 0.01, %v858_v21  ;;  %v982_v41 = vmax.f32 %v866_v24, %v950_v32 }
 0x235   : > { %v860_v26 = vpop.f32.mrf.mxu1 }
 0x236   : > { %v951_v30 = vmul.f32 0.01, %v869_v19  ;;  %v861_v6 = vadd.f32 %v2324_v31, %v860_v26  ;;  %1701 = vmatprep.mubr.bf16.mxu0 %v1004_v25  ;;  %v980_v38 = vmax.f32 %v858_v21, %v948_v28 }
 0x237   : > { %v1663_v33 = vpop.f32.mrf.mxu1  ;;  %1702 = vmatmul.mubr.bf16.gmra.mxu0 %v1005_v27 }
 0x238   : > { %v949_v34 = vmul.f32 0.01, %v861_v6  ;;  %v983_v36 = vmax.f32 %v869_v19, %v951_v30  ;;  %v882_v42 = vadd.f32 %v1663_v33, %v2324_v31 }
 0x239   : > { %v873_v37 = vpop.f32.mrf.mxu1 }
 0x23a   : > { %v981_v39 = vmax.f32 %v861_v6, %v949_v34  ;;  %v874_v40 = vadd.f32 %v2324_v31, %v873_v37  ;;  %v1007_v47 = vpack.c.bf16 %v983_v36, %v982_v41  ;;  %v954_v29 = vmul.f32 0.01, %v882_v42 }
 0x23b   : > { %v1664_v44 = vpop.f32.mrf.mxu1 }
 0x23c   : > { %v885_v7 = vadd.f32 %v1664_v44, %v2324_v31  ;;  %v1006_v45 = vpack.c.bf16 %v981_v39, %v980_v38  ;;  %v952_v14 = vmul.f32 0.01, %v874_v40  ;;  %v986_v57 = vmax.f32 %v882_v42, %v954_v29 }
 0x23d   : > { %v876_v46 = vpop.f32.mrf.mxu1 }
 0x23e   : > { %v955_v48 = vmul.f32 0.01, %v885_v7  ;;  %v877_v49 = vadd.f32 %v2324_v31, %v876_v46  ;;  %1705 = vmatprep.mubr.bf16.mxu0 %v1006_v45  ;;  %v984_v54 = vmax.f32 %v874_v40, %v952_v14 }
 0x23f   : > { %v1667_v43 = vpop.f32.mrf.mxu1  ;;  %1706 = vmatmul.mubr.bf16.gmra.mxu0 %v1007_v47 }
 0x240   : > { %v953_v50 = vmul.f32 0.01, %v877_v49  ;;  %v987_v51 = vmax.f32 %v885_v7, %v955_v48  ;;  %v898_v58 = vadd.f32 %v1667_v43, %v2324_v31 }
 0x241   : > { %v889_v52 = vpop.f32.mrf.mxu1 }
 0x242   : > { %v985_v55 = vmax.f32 %v877_v49, %v953_v50  ;;  %v890_v56 = vadd.f32 %v2324_v31, %v889_v52  ;;  %v1009_v23 = vpack.c.bf16 %v987_v51, %v986_v57  ;;  %v958_v63 = vmul.f32 0.01, %v898_v58  ;;  %v2361_v49 = vld [vmem:[%s2487_s6] ss:$0 sm:$0xff] }
 0x243   : > { %v1668_v59 = vpop.f32.mrf.mxu1 }
 0x244   : > { %v901_v60 = vadd.f32 %v1668_v59, %v2324_v31  ;;  %v1008_v61 = vpack.c.bf16 %v985_v55, %v984_v54  ;;  %v956_v0 = vmul.f32 0.01, %v890_v56  ;;  %v990_v12 = vmax.f32 %v898_v58, %v958_v63 }
 0x245   : > { %v892_v62 = vpop.f32.mrf.mxu1 }
 0x246   : > { %v959_v35 = vmul.f32 0.01, %v901_v60  ;;  %v893_v1 = vadd.f32 %v2324_v31, %v892_v62  ;;  %1709 = vmatprep.mubr.bf16.mxu0 %v1008_v61  ;;  %v988_v8 = vmax.f32 %v890_v56, %v956_v0 }
 0x247   : > { %v1671_v2 = vpop.f32.mrf.mxu1  ;;  %1710 = vmatmul.mubr.bf16.gmra.mxu0 %v1009_v23 }
 0x248   : > { %v957_v3 = vmul.f32 0.01, %v893_v1  ;;  %v991_v4 = vmax.f32 %v901_v60, %v959_v35  ;;  %v914_v13 = vadd.f32 %v1671_v2, %v2324_v31 }
 0x249   : > { %v905_v5 = vpop.f32.mrf.mxu1 }
 0x24a   : > { %v989_v9 = vmax.f32 %v893_v1, %v957_v3  ;;  %v906_v11 = vadd.f32 %v2324_v31, %v905_v5  ;;  %v1011_v18 = vpack.c.bf16 %v991_v4, %v990_v12  ;;  %v962_v24 = vmul.f32 0.01, %v914_v13 }
 0x24b   : > { %v1672_v16 = vpop.f32.mrf.mxu1 }
 0x24c   : > { %v917_v17 = vadd.f32 %v1672_v16, %v2324_v31  ;;  %v1010_v53 = vpack.c.bf16 %v989_v9, %v988_v8  ;;  %v960_v20 = vmul.f32 0.01, %v906_v11  ;;  %v994_v6 = vmax.f32 %v914_v13, %v962_v24 }
 0x24d   : > { %v908_v15 = vpop.f32.mrf.mxu1 }
 0x24e   : > { %v963_v21 = vmul.f32 0.01, %v917_v17  ;;  %v909_v22 = vadd.f32 %v2324_v31, %v908_v15  ;;  %1713 = vmatprep.mubr.bf16.mxu0 %v1010_v53  ;;  %v992_v27 = vmax.f32 %v906_v11, %v960_v20 }
 0x24f   : > { %v1675_v10 = vpop.f32.mrf.mxu1  ;;  %1714 = vmatmul.mubr.bf16.gmra.mxu0 %v1011_v18 }
 0x250   : > { %v961_v19 = vmul.f32 0.01, %v909_v22  ;;  %v995_v25 = vmax.f32 %v917_v17, %v963_v21  ;;  %v930_v32 = vadd.f32 %v1675_v10, %v2324_v31 }
 0x251   : > { %v921_v26 = vpop.f32.mrf.mxu1 }
 0x252   : > { %v993_v28 = vmax.f32 %v909_v22, %v961_v19  ;;  %v922_v30 = vadd.f32 %v2324_v31, %v921_v26  ;;  %v1013_v38 = vpack.c.bf16 %v995_v25, %v994_v6  ;;  %v966_v42 = vmul.f32 0.01, %v930_v32 }
 0x253   : > { %v1676_v33 = vpop.f32.mrf.mxu1 }
 0x254   : > { %v933_v34 = vadd.f32 %v1676_v33, %v2324_v31  ;;  %v1012_v36 = vpack.c.bf16 %v993_v28, %v992_v27  ;;  %v964_v39 = vmul.f32 0.01, %v922_v30  ;;  %v998_v47 = vmax.f32 %v930_v32, %v966_v42 }
 0x255   : > { %v924_v37 = vpop.f32.mrf.mxu1 }
 0x256   : > { %v967_v40 = vmul.f32 0.01, %v933_v34  ;;  %v925_v41 = vadd.f32 %v2324_v31, %v924_v37  ;;  %1717 = vmatprep.mubr.bf16.mxu0 %v1012_v36  ;;  %v996_v45 = vmax.f32 %v922_v30, %v964_v39 }
 0x257   : > { %1718 = vmatmul.mubr.bf16.gmra.mxu0 %v1013_v38 }
 0x258   : > { %v965_v44 = vmul.f32 0.01, %v925_v41  ;;  %v999_v7 = vmax.f32 %v933_v34, %v967_v40 }
 0x25a   : > { %v997_v46 = vmax.f32 %v925_v41, %v965_v44  ;;  %v1015_v48 = vpack.c.bf16 %v999_v7, %v998_v47 }
 0x25c   : > { %v1014_v14 = vpack.c.bf16 %v997_v46, %v996_v45 }
 0x25e   : > { %1721 = vmatprep.mubr.bf16.mxu0 %v1014_v14 }
 0x25f   : > { %1722 = vmatmul.mubr.bf16.gmra.mxu0 %v1015_v48 }
 0x2e7   : > { %v1695_v29 = vpop.f32.mrf.mxu0 }
 0x2e8   : > { %v1130_v31 = vadd.f32 %v1695_v29, %v2361_v49 }
 0x2e9   : > { %v1121_v43 = vpop.f32.mrf.mxu0 }
 0x2ea   : > { %v1250_v50 = vmul.f32 0.01, %v1130_v31  ;;  %v1122_v51 = vadd.f32 %v2361_v49, %v1121_v43 }
 0x2eb   : > { %v1696_v52 = vpop.f32.mrf.mxu0 }
 0x2ec   : > { %v1282_v54 = vmax.f32 %v1130_v31, %v1250_v50  ;;  %v1248_v55 = vmul.f32 0.01, %v1122_v51  ;;  %v1133_v56 = vadd.f32 %v1696_v52, %v2361_v49 }
 0x2ed   : > { %v1124_v57 = vpop.f32.mrf.mxu0 }
 0x2ee   : > { %1314 = vst [vmem:[%s2368_s21 + $0x10] sm:$0xff] %v1282_v54  ;;  %v1280_v58 = vmax.f32 %v1122_v51, %v1248_v55  ;;  %v1251_v59 = vmul.f32 0.01, %v1133_v56  ;;  %v1125_v60 = vadd.f32 %v2361_v49, %v1124_v57 }
 0x2ef   : > { %v1699_v61 = vpop.f32.mrf.mxu0 }
 0x2f0   : > { %1312 = vst [vmem:[%s2368_s21] sm:$0xff] %v1280_v58  ;;  %v1283_v62 = vmax.f32 %v1133_v56, %v1251_v59  ;;  %v1249_v23 = vmul.f32 0.01, %v1125_v60  ;;  %v1146_v0 = vadd.f32 %v1699_v61, %v2361_v49 }
 0x2f1   : > { %v1137_v35 = vpop.f32.mrf.mxu0 }
 0x2f2   : > { %1315 = vst [vmem:[%s2368_s21 + $0x18] sm:$0xff] %v1283_v62  ;;  %v1281_v1 = vmax.f32 %v1125_v60, %v1249_v23  ;;  %v1254_v63 = vmul.f32 0.01, %v1146_v0  ;;  %v1138_v2 = vadd.f32 %v2361_v49, %v1137_v35 }
 0x2f3   : > { %v1700_v3 = vpop.f32.mrf.mxu0 }
 0x2f4   : > { %1313 = vst [vmem:[%s2368_s21 + $0x8] sm:$0xff] %v1281_v1  ;;  %v1286_v4 = vmax.f32 %v1146_v0, %v1254_v63  ;;  %v1252_v5 = vmul.f32 0.01, %v1138_v2  ;;  %v1149_v8 = vadd.f32 %v1700_v3, %v2361_v49 }
 0x2f5   : > { %v1140_v9 = vpop.f32.mrf.mxu0 }
 0x2f6   : > { %1318 = vst [vmem:[%s2368_s21 + $0x30] sm:$0xff] %v1286_v4  ;;  %v1284_v11 = vmax.f32 %v1138_v2, %v1252_v5  ;;  %v1255_v12 = vmul.f32 0.01, %v1149_v8  ;;  %v1141_v13 = vadd.f32 %v2361_v49, %v1140_v9 }
 0x2f7   : > { %v1703_v16 = vpop.f32.mrf.mxu0 }
 0x2f8   : > { %1316 = vst [vmem:[%s2368_s21 + $0x20] sm:$0xff] %v1284_v11  ;;  %v1287_v17 = vmax.f32 %v1149_v8, %v1255_v12  ;;  %v1253_v53 = vmul.f32 0.01, %v1141_v13  ;;  %v1162_v15 = vadd.f32 %v1703_v16, %v2361_v49 }
 0x2f9   : > { %v1153_v18 = vpop.f32.mrf.mxu0 }
 0x2fa   : > { %1319 = vst [vmem:[%s2368_s21 + $0x38] sm:$0xff] %v1287_v17  ;;  %v1285_v20 = vmax.f32 %v1141_v13, %v1253_v53  ;;  %v1258_v21 = vmul.f32 0.01, %v1162_v15  ;;  %v1154_v22 = vadd.f32 %v2361_v49, %v1153_v18 }
 0x2fb   : > { %v1704_v24 = vpop.f32.mrf.mxu0 }
 0x2fc   : > { %1317 = vst [vmem:[%s2368_s21 + $0x28] sm:$0xff] %v1285_v20  ;;  %v1290_v10 = vmax.f32 %v1162_v15, %v1258_v21  ;;  %v1256_v19 = vmul.f32 0.01, %v1154_v22  ;;  %v1165_v25 = vadd.f32 %v1704_v24, %v2361_v49 }
 0x2fd   : > { %v1156_v26 = vpop.f32.mrf.mxu0 }
 0x2fe   : > { %1322 = vst [vmem:[%s2368_s21 + $0x50] sm:$0xff] %v1290_v10  ;;  %v1288_v27 = vmax.f32 %v1154_v22, %v1256_v19  ;;  %v1259_v28 = vmul.f32 0.01, %v1165_v25  ;;  %v1157_v30 = vadd.f32 %v2361_v49, %v1156_v26 }
 0x2ff   : > { %v1707_v6 = vpop.f32.mrf.mxu0 }
 0x300   : > { %1320 = vst [vmem:[%s2368_s21 + $0x40] sm:$0xff] %v1288_v27  ;;  %v1291_v32 = vmax.f32 %v1165_v25, %v1259_v28  ;;  %v1257_v33 = vmul.f32 0.01, %v1157_v30  ;;  %v1178_v34 = vadd.f32 %v1707_v6, %v2361_v49 }
 0x301   : > { %v1169_v36 = vpop.f32.mrf.mxu0 }
 0x302   : > { %1323 = vst [vmem:[%s2368_s21 + $0x58] sm:$0xff] %v1291_v32  ;;  %v1289_v37 = vmax.f32 %v1157_v30, %v1257_v33  ;;  %v1262_v38 = vmul.f32 0.01, %v1178_v34  ;;  %v1170_v39 = vadd.f32 %v2361_v49, %v1169_v36 }
 0x303   : > { %v1708_v40 = vpop.f32.mrf.mxu0 }
 0x304   : > { %1321 = vst [vmem:[%s2368_s21 + $0x48] sm:$0xff] %v1289_v37  ;;  %v1294_v41 = vmax.f32 %v1178_v34, %v1262_v38  ;;  %v1260_v42 = vmul.f32 0.01, %v1170_v39  ;;  %v1181_v44 = vadd.f32 %v1708_v40, %v2361_v49 }
 0x305   : > { %v1172_v7 = vpop.f32.mrf.mxu0 }
 0x306   : > { %1326 = vst [vmem:[%s2368_s21 + $0x70] sm:$0xff] %v1294_v41  ;;  %v1292_v45 = vmax.f32 %v1170_v39, %v1260_v42  ;;  %v1263_v46 = vmul.f32 0.01, %v1181_v44  ;;  %v1173_v47 = vadd.f32 %v2361_v49, %v1172_v7 }
 0x307   : > { %v1711_v14 = vpop.f32.mrf.mxu0 }
 0x308   : > { %1324 = vst [vmem:[%s2368_s21 + $0x60] sm:$0xff] %v1292_v45  ;;  %v1295_v48 = vmax.f32 %v1181_v44, %v1263_v46  ;;  %v1261_v29 = vmul.f32 0.01, %v1173_v47  ;;  %v1194_v31 = vadd.f32 %v1711_v14, %v2361_v49 }
 0x309   : > { %v1185_v43 = vpop.f32.mrf.mxu0 }
 0x30a   : > { %1327 = vst [vmem:[%s2368_s21 + $0x78] sm:$0xff] %v1295_v48  ;;  %v1293_v50 = vmax.f32 %v1173_v47, %v1261_v29  ;;  %v1266_v51 = vmul.f32 0.01, %v1194_v31  ;;  %v1186_v52 = vadd.f32 %v2361_v49, %v1185_v43 }
 0x30b   : > { %v1712_v54 = vpop.f32.mrf.mxu0 }
 0x30c   : > { %1325 = vst [vmem:[%s2368_s21 + $0x68] sm:$0xff] %v1293_v50  ;;  %v1298_v55 = vmax.f32 %v1194_v31, %v1266_v51  ;;  %v1264_v56 = vmul.f32 0.01, %v1186_v52  ;;  %v1197_v57 = vadd.f32 %v1712_v54, %v2361_v49 }
 0x30d   : > { %v1188_v58 = vpop.f32.mrf.mxu0 }
 0x30e   : > { %1330 = vst [vmem:[%s2368_s21 + $0x90] sm:$0xff] %v1298_v55  ;;  %v1296_v59 = vmax.f32 %v1186_v52, %v1264_v56  ;;  %v1267_v60 = vmul.f32 0.01, %v1197_v57  ;;  %v1189_v61 = vadd.f32 %v2361_v49, %v1188_v58 }
 0x30f   : > { %v1715_v62 = vpop.f32.mrf.mxu0 }
 0x310   : > { %1328 = vst [vmem:[%s2368_s21 + $0x80] sm:$0xff] %v1296_v59  ;;  %v1299_v23 = vmax.f32 %v1197_v57, %v1267_v60  ;;  %v1265_v0 = vmul.f32 0.01, %v1189_v61  ;;  %v1210_v35 = vadd.f32 %v1715_v62, %v2361_v49 }
 0x311   : > { %v1201_v1 = vpop.f32.mrf.mxu0 }
 0x312   : > { %1331 = vst [vmem:[%s2368_s21 + $0x98] sm:$0xff] %v1299_v23  ;;  %v1297_v63 = vmax.f32 %v1189_v61, %v1265_v0  ;;  %v1270_v2 = vmul.f32 0.01, %v1210_v35  ;;  %v1202_v3 = vadd.f32 %v2361_v49, %v1201_v1 }
 0x313   : > { %v1716_v4 = vpop.f32.mrf.mxu0 }
 0x314   : > { %1329 = vst [vmem:[%s2368_s21 + $0x88] sm:$0xff] %v1297_v63  ;;  %v1302_v5 = vmax.f32 %v1210_v35, %v1270_v2  ;;  %v1268_v8 = vmul.f32 0.01, %v1202_v3  ;;  %v1213_v9 = vadd.f32 %v1716_v4, %v2361_v49 }
 0x315   : > { %v1204_v11 = vpop.f32.mrf.mxu0 }
 0x316   : > { %1334 = vst [vmem:[%s2368_s21 + $0xb0] sm:$0xff] %v1302_v5  ;;  %v1300_v12 = vmax.f32 %v1202_v3, %v1268_v8  ;;  %v1271_v13 = vmul.f32 0.01, %v1213_v9  ;;  %v1205_v16 = vadd.f32 %v2361_v49, %v1204_v11 }
 0x317   : > { %v1719_v17 = vpop.f32.mrf.mxu0 }
 0x318   : > { %1332 = vst [vmem:[%s2368_s21 + $0xa0] sm:$0xff] %v1300_v12  ;;  %v1303_v53 = vmax.f32 %v1213_v9, %v1271_v13  ;;  %v1269_v15 = vmul.f32 0.01, %v1205_v16  ;;  %v1226_v18 = vadd.f32 %v1719_v17, %v2361_v49 }
 0x319   : > { %v1217_v20 = vpop.f32.mrf.mxu0 }
 0x31a   : > { %1335 = vst [vmem:[%s2368_s21 + $0xb8] sm:$0xff] %v1303_v53  ;;  %v1301_v21 = vmax.f32 %v1205_v16, %v1269_v15  ;;  %v1274_v22 = vmul.f32 0.01, %v1226_v18  ;;  %v1218_v24 = vadd.f32 %v2361_v49, %v1217_v20 }
 0x31b   : > { %v1720_v10 = vpop.f32.mrf.mxu0 }
 0x31c   : > { %1333 = vst [vmem:[%s2368_s21 + $0xa8] sm:$0xff] %v1301_v21  ;;  %v1306_v19 = vmax.f32 %v1226_v18, %v1274_v22  ;;  %v1272_v25 = vmul.f32 0.01, %v1218_v24  ;;  %v1229_v26 = vadd.f32 %v1720_v10, %v2361_v49 }
 0x31d   : > { %v1220_v27 = vpop.f32.mrf.mxu0 }
 0x31e   : > { %1338 = vst [vmem:[%s2368_s21 + $0xd0] sm:$0xff] %v1306_v19  ;;  %v1304_v28 = vmax.f32 %v1218_v24, %v1272_v25  ;;  %v1275_v30 = vmul.f32 0.01, %v1229_v26  ;;  %v1221_v6 = vadd.f32 %v2361_v49, %v1220_v27 }
 0x31f   : > { %v1723_v32 = vpop.f32.mrf.mxu0 }
 0x320   : > { %1336 = vst [vmem:[%s2368_s21 + $0xc0] sm:$0xff] %v1304_v28  ;;  %v1307_v33 = vmax.f32 %v1229_v26, %v1275_v30  ;;  %v1273_v34 = vmul.f32 0.01, %v1221_v6  ;;  %v1242_v36 = vadd.f32 %v1723_v32, %v2361_v49 }
 0x321   : > { %v1233_v37 = vpop.f32.mrf.mxu0 }
 0x322   : > { %1339 = vst [vmem:[%s2368_s21 + $0xd8] sm:$0xff] %v1307_v33  ;;  %v1305_v38 = vmax.f32 %v1221_v6, %v1273_v34  ;;  %v1278_v39 = vmul.f32 0.01, %v1242_v36  ;;  %v1234_v40 = vadd.f32 %v2361_v49, %v1233_v37 }
 0x323   : > { %v1724_v41 = vpop.f32.mrf.mxu0 }
 0x324   : > { %1337 = vst [vmem:[%s2368_s21 + $0xc8] sm:$0xff] %v1305_v38  ;;  %v1310_v42 = vmax.f32 %v1242_v36, %v1278_v39  ;;  %v1276_v44 = vmul.f32 0.01, %v1234_v40  ;;  %v1245_v7 = vadd.f32 %v1724_v41, %v2361_v49 }
 0x325   : > { %v1236_v45 = vpop.f32.mrf.mxu0 }
 0x326   : > { %1342 = vst [vmem:[%s2368_s21 + $0xf0] sm:$0xff] %v1310_v42  ;;  %v1308_v46 = vmax.f32 %v1234_v40, %v1276_v44  ;;  %v1279_v47 = vmul.f32 0.01, %v1245_v7  ;;  %v1237_v14 = vadd.f32 %v2361_v49, %v1236_v45 }
 0x328   : > { %1340 = vst [vmem:[%s2368_s21 + $0xe0] sm:$0xff] %v1308_v46  ;;  %v1311_v48 = vmax.f32 %v1245_v7, %v1279_v47  ;;  %v1277_v29 = vmul.f32 0.01, %v1237_v14 }
 0x32a   : > { %1343 = vst [vmem:[%s2368_s21 + $0xf8] sm:$0xff] %v1311_v48  ;;  %v1309_v31 = vmax.f32 %v1237_v14, %v1277_v29 }
 0x32c   : > { %1341 = vst [vmem:[%s2368_s21 + $0xe8] sm:$0xff] %v1309_v31 }
 0x32d   : > { %1967 = shalt.err (!%p1964_p9)
}
 0x32e   : > { %s1968_s23 = scalar_lea.hbm %s2434_s1, 4096  ;;  %s1972_s13 = scalar_lea.hbm %s2488_s7, 8192 }
 0x32f   : > { %p1969_p1 = scmp.ne.s32.totalorder %s2434_s1, %s1968_s23  ;;  %p1973_p11 = scmp.lt.s32.totalorder %s2434_s1, %s2488_s7 }
 0x330   : > { %p1974_p13 = scmp.lt.s32.totalorder %s1972_s13, %s1968_s23 }
 0x331   : > { %p1970_p8 = pnand %p1969_p1, %p2508_p6 }
 0x332   : > { %p1975_p2 = por %p1974_p13, %p1973_p11 }
 0x333   : > { %p1971_p10 = pneg %p1970_p8 }
 0x335   : > { %p1976_p4 = pnand %p1975_p2, %p1971_p10 }
 0x337   : > { %1979 = shalt.err (!%p1976_p4)
}
 0x338   : > { %s2037_s15 = smov 128   ;;  %s2038_s22 = smov 8  }
 0x339   : > { %1755 = dma.vmem_to_hbm [thread:$0]  (%p2508_p6), %s2436_s12, 4096, %s2434_s1, %s1345_s18, %s2037_s15, %s2037_s15, %s2038_s22  }
 0x33a PF: > { %s1373_s19 = sand.u32 1, %s2014_s24   ;;  %p2509_p12 = scmp.ne.s32.totalorder %s2495_s8, 0 }
 0x33b   : > { %p2510_p0 = scmp.ge.s32.totalorder %s2026_s27, 2  ;;  %s1374_s28 = scalar_lea.sflag [#allocation4], %s1373_s19 }
 0x33d   : > { %p1772_p5 = pnand %p2510_p0, %p2509_p12 }
 0x33f   : > { %p1773_p3 = pneg %p1772_p5 }
 0x341   : > { %2009 = dma.done.wait (%p1773_p3), %s1374_s28, 4096  }
 0x342   : > { %2011 = vsyncadd (%p1773_p3), %s1374_s28, 4294963200  ;;  %p22_p7 = scmp.ge.s32.totalorder %s2159_s14, 4   ;;  %s2511_s24 = smov %s2018_s25 }
 0x343   : > { %s2512_s25 = smov %s2022_s26  ;;  %s2513_s26 = smov %s2169_s17 }
 0x344   : > { %s2514_s27 = smov %s2159_s14  ;;  %24 = sbr.rel (!%p22_p7) target bundleno = 9 (0x9), region = 105 }
 0x349   :  { %1379 = vsyncpa [#allocation3], 1 }
 0x34a   :  { %1381 = vsyncpa [#allocation3 + $0x1], 1 }
 0x34b   :  { %1382 = vsyncpa [#allocation6], 1 }
 0x34c   :  { %1383 = vsyncpa [#allocation9], 1 }
 0x34d   :  { %1384 = vsyncpa [#allocation4], 1 }
 0x34e   :  { %1386 = vsyncpa [#allocation4 + $0x1], 1 }

</bundles_post_ra>
